<compile_context>
chip_gen: v7x
topology: tpu7x:2x2x1
jax: 0.10.0
libtpu: 0.0.40
codegen_flags: <defaults>
</compile_context>

<pallas_src>
import math

import jax
import jax.numpy as jnp
from jax import lax
from jax.experimental import pallas as pl
from jax.experimental.pallas import tpu as pltpu

# ----------------------------- configuration --------------------------------
B = 2                      # batch
C_IMG = 3                  # image channels
IMG = 16                   # image spatial size
PS = 8                     # patch size (surrogate vision tower)
NP = (IMG // PS) ** 2      # number of patches
PATCH_DIM = C_IMG * PS * PS
DV = 32                    # surrogate vision width
NUM_FEATURES = 7           # tabular covariates (params['num_features'])
H_DIM = 32                 # params['h_dim']
NUM_HEADS = 2
HEAD_DIM = H_DIM // NUM_HEADS
NUM_TREATMENTS = 4
EPS = 1e-5

# ---- Wall slab layout --------------------------------------------------------
# rows 0:H_DIM                 -> weight matrices, lane-concatenated (C_* offsets)
# rows H_DIM:H_DIM+N_BIAS_PAD  -> bias / BN vectors in lanes 0:128 (rest zero)
C_ENC_QKV = 0 * H_DIM          # (H, 3H) fused encoder QKV projection
C_ENC_O   = 3 * H_DIM
C_ENC_W1  = 4 * H_DIM
C_ENC_W2  = 5 * H_DIM
C_DEC_SA  = 6 * H_DIM          # folded decoder self-attn (Wv @ Wo)
C_DEC_CAQ = 7 * H_DIM
C_DEC_CAKV = 8 * H_DIM         # (H, 2H) fused cross-attn K|V projection
C_DEC_CAO = 10 * H_DIM
C_DEC_W1  = 11 * H_DIM
C_DEC_W2  = 12 * H_DIM
C_Q_W1    = 13 * H_DIM
C_Q_W2    = 14 * H_DIM
N_W_LANES = 15 * H_DIM         # 480

# bias row indices (rows of the bias band inside the Wall slab)
R_B_PATCH, R_LN_G, R_LN_B, R_B_VPROJ = 0, 1, 2, 3
R_W_FEAT, R_B_FEAT, R_W_TREAT, R_B_TREAT = 4, 5, 6, 7
R_ENC_BQKV, R_ENC_BO, R_ENC_B1, R_ENC_B2 = 8, 9, 10, 11
R_ENC_BN1_G, R_ENC_BN1_B, R_ENC_BN2_G, R_ENC_BN2_B = 12, 13, 14, 15
R_DEC_SA_B, R_DEC_CA_BQ, R_DEC_CA_BKV, R_DEC_CA_BO = 16, 17, 18, 19
R_DEC_B1, R_DEC_B2, R_Q_B1 = 20, 21, 22
N_BIAS_ROWS = 23
N_BIAS_PAD = 24

# SMEM scalar indices (decoder BN gamma/beta + Q-head bias)
S_BN1_G, S_BN1_B, S_BN2_G, S_BN2_B, S_BN3_G, S_BN3_B, S_Q_B2 = 0, 1, 2, 3, 4, 5, 6


# ------------------------------- in-kernel math ------------------------------
def _bn_tokens(xb, gamma, beta):
    """BatchNorm1d(C) training-mode batch statistics, single-pass (E[x], E[x^2]).
    xb: (B, C, H); gamma/beta broadcastable to (1, C, 1) (vector or scalar)."""
    n = xb.shape[0] * xb.shape[2]
    s1 = jnp.sum(jnp.sum(xb, axis=2, keepdims=True), axis=0, keepdims=True)
    s2 = jnp.sum(jnp.sum(xb * xb, axis=2, keepdims=True), axis=0, keepdims=True)
    m = s1 * (1.0 / n)
    v = s2 * (1.0 / n) - m * m                      # biased variance
    return (xb - m) * (lax.rsqrt(v + EPS) * gamma) + beta


def _attn_core(q, k, v, Wo, bo):
    """Merged-head MHA core. q:(B,Lq,H), k/v:(B,Lk,H).
    Heads folded into the leading axis -> one scores einsum, one p@v einsum,
    lane-concat of head outputs, one Wo matmul."""
    Bb, Lq, H = q.shape
    scale = 1.0 / math.sqrt(HEAD_DIM)

    def split_heads(x):   # (B, L, H) -> (NH*B, L, HD), head-major leading axis
        return jnp.concatenate(
            [x[:, :, h * HEAD_DIM:(h + 1) * HEAD_DIM] for h in range(NUM_HEADS)],
            axis=0)

    qm = split_heads(q) * scale
    km = split_heads(k)
    vm = split_heads(v)
    s = jnp.einsum('bqd,bkd->bqk', qm, km, preferred_element_type=jnp.float32)
    # no max-subtraction: f32 scores, L<=8, scale 1/sqrt(16) -> exp cannot overflow here
    p = jnp.exp(s)
    p = p * pl.reciprocal(jnp.sum(p, axis=-1, keepdims=True), approx=True)
    o = jnp.einsum('bqk,bkd->bqd', p, vm, preferred_element_type=jnp.float32)
    om = jnp.concatenate([o[h * Bb:(h + 1) * Bb] for h in range(NUM_HEADS)], axis=-1)
    out = jnp.dot(om.reshape(Bb * Lq, H), Wo, preferred_element_type=jnp.float32) + bo
    return out.reshape(Bb, Lq, H)


def _transtee_kernel(scal_ref, data_ref, wvis_ref, wall_ref, out_ref):
    H = H_DIM
    F = NUM_FEATURES
    Bb = data_ref.shape[0] // (NP + 1)

    bias = wall_ref[H:H + N_BIAS_PAD, 0:128]                  # (24, 128) bias band
    W = wall_ref                                              # weight rows 0:H

    # ---- surrogate CLIP image tower + replaced visual_projection (B, H) ----
    # TODO(synk): pretrained CLIP ViT-B/32 (self.img_emb) has no clean in-script
    # Pallas equivalent; surrogate = patch-embed -> mean-pool -> LN -> Linear(h_dim).
    pf = data_ref[0:Bb * NP, :]                               # (B*NP, PATCH_DIM)
    pe = jnp.dot(pf, wvis_ref[0:PATCH_DIM, :],
                 preferred_element_type=jnp.float32) + bias[R_B_PATCH:R_B_PATCH + 1, 0:DV]
    pooled = jnp.mean(pe.reshape(Bb, NP, DV), axis=1)         # (B, DV)
    mu = jnp.mean(pooled, axis=-1, keepdims=True)
    var = jnp.mean(pooled * pooled, axis=-1, keepdims=True) - mu * mu
    ln = (pooled - mu) * (lax.rsqrt(var + EPS) * bias[R_LN_G:R_LN_G + 1, 0:DV]) \
        + bias[R_LN_B:R_LN_B + 1, 0:DV]
    image_emb = jnp.dot(ln, wvis_ref[PATCH_DIM:PATCH_DIM + DV, :],
                        preferred_element_type=jnp.float32) \
        + bias[R_B_VPROJ:R_B_VPROJ + 1, 0:H]                  # (B, H)

    # ---- feature embedding: Embeddings(h_dim) == relu(Linear(1,H)) per value ----
    xt = data_ref[Bb * NP:Bb * NP + Bb, 0:F + 1]              # (B, F+1) = x | t
    x = xt[:, 0:F]
    t = xt[:, F:F + 1]
    W_feat = bias[R_W_FEAT:R_W_FEAT + 1, 0:H].reshape(1, 1, H)
    b_feat = bias[R_B_FEAT:R_B_FEAT + 1, 0:H].reshape(1, 1, H)
    src = jax.nn.relu(x.reshape(Bb, F, 1) * W_feat + b_feat)  # (B, F, H)

    # ---- TransformerEncoderLayer: fused-QKV self-attn + BN + FF + BN ----
    qkv = jnp.dot(src.reshape(Bb * F, H), W[0:H, C_ENC_QKV:C_ENC_QKV + 3 * H],
                  preferred_element_type=jnp.float32) \
        + bias[R_ENC_BQKV:R_ENC_BQKV + 1, 0:3 * H]            # (B*F, 3H)
    attn = _attn_core(qkv[:, 0:H].reshape(Bb, F, H),
                      qkv[:, H:2 * H].reshape(Bb, F, H),
                      qkv[:, 2 * H:3 * H].reshape(Bb, F, H),
                      W[0:H, C_ENC_O:C_ENC_O + H],
                      bias[R_ENC_BO:R_ENC_BO + 1, 0:H])
    src = _bn_tokens(src + attn,
                     bias[R_ENC_BN1_G:R_ENC_BN1_G + 1, 0:F].reshape(1, F, 1),
                     bias[R_ENC_BN1_B:R_ENC_BN1_B + 1, 0:F].reshape(1, F, 1))
    h1 = jax.nn.relu(jnp.dot(src.reshape(Bb * F, H), W[0:H, C_ENC_W1:C_ENC_W1 + H],
                             preferred_element_type=jnp.float32)
                     + bias[R_ENC_B1:R_ENC_B1 + 1, 0:H])
    ff = (jnp.dot(h1, W[0:H, C_ENC_W2:C_ENC_W2 + H], preferred_element_type=jnp.float32)
          + bias[R_ENC_B2:R_ENC_B2 + 1, 0:H]).reshape(Bb, F, H)
    memory = _bn_tokens(src + ff,
                        bias[R_ENC_BN2_G:R_ENC_BN2_G + 1, 0:F].reshape(1, F, 1),
                        bias[R_ENC_BN2_B:R_ENC_BN2_B + 1, 0:F].reshape(1, F, 1))

    # ---- concat image token with covariate memory (in-register, no scratch) ----
    mem_full = jnp.concatenate([image_emb.reshape(Bb, 1, H), memory], axis=1)  # (B,F+1,H)

    # ---- treatment embedding (act='id') ----
    W_treat = bias[R_W_TREAT:R_W_TREAT + 1, 0:H].reshape(1, 1, H)
    b_treat = bias[R_B_TREAT:R_B_TREAT + 1, 0:H].reshape(1, 1, H)
    tgt = t.reshape(Bb, 1, 1) * W_treat + b_treat             # (B, 1, H)

    # ---- TransformerDecoderLayer (1 layer, num_t = 1) ----
    # self-attn folded (single token => softmax is identity): tgt@(Wv@Wo) + (bv@Wo+bo)
    sa = (jnp.dot(tgt.reshape(Bb, H), W[0:H, C_DEC_SA:C_DEC_SA + H],
                  preferred_element_type=jnp.float32)
          + bias[R_DEC_SA_B:R_DEC_SA_B + 1, 0:H]).reshape(Bb, 1, H)
    tgt = _bn_tokens(tgt + sa, scal_ref[S_BN1_G], scal_ref[S_BN1_B])

    # cross-attn: Q from tgt, fused (H, 2H) K|V from mem_full
    q_ca = (jnp.dot(tgt.reshape(Bb, H), W[0:H, C_DEC_CAQ:C_DEC_CAQ + H],
                    preferred_element_type=jnp.float32)
            + bias[R_DEC_CA_BQ:R_DEC_CA_BQ + 1, 0:H]).reshape(Bb, 1, H)
    kv = jnp.dot(mem_full.reshape(Bb * (F + 1), H),
                 W[0:H, C_DEC_CAKV:C_DEC_CAKV + 2 * H],
                 preferred_element_type=jnp.float32) \
        + bias[R_DEC_CA_BKV:R_DEC_CA_BKV + 1, 0:2 * H]        # (B*(F+1), 2H)
    ca = _attn_core(q_ca,
                    kv[:, 0:H].reshape(Bb, F + 1, H),
                    kv[:, H:2 * H].reshape(Bb, F + 1, H),
                    W[0:H, C_DEC_CAO:C_DEC_CAO + H],
                    bias[R_DEC_CA_BO:R_DEC_CA_BO + 1, 0:H])
    tgt = _bn_tokens(tgt + ca, scal_ref[S_BN2_G], scal_ref[S_BN2_B])

    h1d = jax.nn.relu(jnp.dot(tgt.reshape(Bb, H), W[0:H, C_DEC_W1:C_DEC_W1 + H],
                              preferred_element_type=jnp.float32)
                      + bias[R_DEC_B1:R_DEC_B1 + 1, 0:H])
    ffd = (jnp.dot(h1d, W[0:H, C_DEC_W2:C_DEC_W2 + H], preferred_element_type=jnp.float32)
           + bias[R_DEC_B2:R_DEC_B2 + 1, 0:H]).reshape(Bb, 1, H)
    tgt = _bn_tokens(tgt + ffd, scal_ref[S_BN3_G], scal_ref[S_BN3_B])

    # ---- out.squeeze(0) (single treatment token) and Q head MLP ----
    # Write the full (B, H) result (no in-kernel 1-lane slice); col 0 is valid.
    out2 = tgt.reshape(Bb, H)
    qh = jax.nn.relu(jnp.dot(out2, W[0:H, C_Q_W1:C_Q_W1 + H],
                             preferred_element_type=jnp.float32)
                     + bias[R_Q_B1:R_Q_B1 + 1, 0:H])
    out_ref[...] = jnp.dot(qh, W[0:H, C_Q_W2:C_Q_W2 + H],
                           preferred_element_type=jnp.float32) + scal_ref[S_Q_B2]


# ------------------------- host-side parameter packing ------------------------
def pack_params(p):
    """Pack ~60 tiny parameter tensors into 2 VMEM slabs + 1 SMEM scalar vector."""
    Hh = H_DIM
    # vision slab: rows 0:PATCH_DIM = W_patch, rows PATCH_DIM:PATCH_DIM+DV = W_vproj
    Wvis = jnp.concatenate([p["W_patch"], p["W_vproj"]], axis=0).astype(jnp.float32)

    # fold decoder single-token self-attention: out = tgt @ (Wv@Wo) + (bv@Wo + bo)
    sa_W = p["dec_sa_Wv"] @ p["dec_sa_Wo"]
    sa_b = p["dec_sa_bv"] @ p["dec_sa_Wo"] + p["dec_sa_bo"]
    q_W2_pad = jnp.pad(p["q_W2"], ((0, 0), (0, Hh - 1)))      # (H, H), col 0 valid

    Wmat = jnp.concatenate([
        p["enc_Wq"], p["enc_Wk"], p["enc_Wv"],                 # C_ENC_QKV
        p["enc_Wo"],                                           # C_ENC_O
        p["enc_W1"], p["enc_W2"],                              # C_ENC_W1 / C_ENC_W2
        sa_W,                                                  # C_DEC_SA
        p["dec_ca_Wq"],                                        # C_DEC_CAQ
        p["dec_ca_Wk"], p["dec_ca_Wv"],                        # C_DEC_CAKV
        p["dec_ca_Wo"],                                        # C_DEC_CAO
        p["dec_W1"], p["dec_W2"],                              # C_DEC_W1 / C_DEC_W2
        p["q_W1"], q_W2_pad,                                   # C_Q_W1 / C_Q_W2
    ], axis=1).astype(jnp.float32)                             # (32, 480)
    assert Wmat.shape == (Hh, N_W_LANES)

    bias_entries = [
        (R_B_PATCH, p["b_patch"]), (R_LN_G, p["ln_g"]),
        (R_LN_B, p["ln_b"]), (R_B_VPROJ, p["b_vproj"]),
        (R_W_FEAT, p["W_feat"]), (R_B_FEAT, p["b_feat"]),
        (R_W_TREAT, p["W_treat"]), (R_B_TREAT, p["b_treat"]),
        (R_ENC_BQKV, jnp.concatenate([p["enc_bq"], p["enc_bk"], p["enc_bv"]], axis=1)),
        (R_ENC_BO, p["enc_bo"]), (R_ENC_B1, p["enc_b1"]), (R_ENC_B2, p["enc_b2"]),
        (R_ENC_BN1_G, p["enc_bn1_g"]), (R_ENC_BN1_B, p["enc_bn1_b"]),
        (R_ENC_BN2_G, p["enc_bn2_g"]), (R_ENC_BN2_B, p["enc_bn2_b"]),
        (R_DEC_SA_B, sa_b), (R_DEC_CA_BQ, p["dec_ca_bq"]),
        (R_DEC_CA_BKV, jnp.concatenate([p["dec_ca_bk"], p["dec_ca_bv"]], axis=1)),
        (R_DEC_CA_BO, p["dec_ca_bo"]),
        (R_DEC_B1, p["dec_b1"]), (R_DEC_B2, p["dec_b2"]), (R_Q_B1, p["q_b1"]),
    ]
    # guard against silent mispacking: row constants must match list order exactly
    assert [r for r, _ in bias_entries] == list(range(N_BIAS_ROWS)), "bias row order mismatch"

    rows = []
    for _, vec in bias_entries:
        v = jnp.asarray(vec, jnp.float32).reshape(-1)
        rows.append(jnp.zeros((128,), jnp.float32).at[0:v.shape[0]].set(v))
    while len(rows) < N_BIAS_PAD:
        rows.append(jnp.zeros((128,), jnp.float32))
    bias_slab = jnp.pad(jnp.stack(rows, axis=0), ((0, 0), (0, N_W_LANES - 128)))

    Wall = jnp.concatenate([Wmat, bias_slab], axis=0)          # (56, 480)

    scalars = jnp.stack([p["dec_bn1_g"][0, 0], p["dec_bn1_b"][0, 0],
                         p["dec_bn2_g"][0, 0], p["dec_bn2_b"][0, 0],
                         p["dec_bn3_g"][0, 0], p["dec_bn3_b"][0, 0],
                         p["q_b2"][0, 0],
                         jnp.zeros((), jnp.float32)]).astype(jnp.float32)  # (8,)
    return scalars, Wvis, Wall


# ------------------------------- wrapper (glue) -------------------------------
@jax.jit
def _forward_packed(images, x, t, scalars, Wvis, Wall):
    b, c, h, w = images.shape
    hp, wp = h // PS, w // PS
    # NCHW -> (B*num_patches, C*PS*PS), patch flattened as (C, ph, pw)
    patches = images.reshape(b, c, hp, PS, wp, PS)
    patches = patches.transpose(0, 2, 4, 1, 3, 5).reshape(b * hp * wp, c * PS * PS)
    patches = patches.astype(jnp.float32)
    # x and t packed into B extra rows of the same slab (one input DMA total)
    xt = jnp.concatenate([x.astype(jnp.float32).reshape(b, NUM_FEATURES),
                          t.astype(jnp.float32).reshape(b, 1)], axis=1)
    xt = jnp.pad(xt, ((0, 0), (0, PATCH_DIM - (NUM_FEATURES + 1))))
    data = jnp.concatenate([patches, xt], axis=0)              # (B*NP + B, PATCH_DIM)

    qfull = pl.pallas_call(
        _transtee_kernel,
        out_shape=jax.ShapeDtypeStruct((b, H_DIM), jnp.float32),
        in_specs=[
            pl.BlockSpec(memory_space=pltpu.MemorySpace.SMEM),   # 7 BN/Q scalars
            pl.BlockSpec(memory_space=pltpu.MemorySpace.VMEM),   # data slab
            pl.BlockSpec(memory_space=pltpu.MemorySpace.VMEM),   # vision weights
            pl.BlockSpec(memory_space=pltpu.MemorySpace.VMEM),   # enc+dec weights+biases
        ],
        out_specs=pl.BlockSpec(memory_space=pltpu.MemorySpace.VMEM),
    )(scalars, data, Wvis, Wall)
    return qfull[:, 0:1]                                       # (B, 1)


def make_transtee_forward(params):
    """Pack parameters once (hoisted out of the per-call path) and return a
    jitted forward(images, x, t) -> (B, 1)."""
    packed = pack_params(params)

    def forward(images, x, t):
        return _forward_packed(images, x, t, *packed)

    return forward


# ------------------------------ parameter init --------------------------------
def init_params(key):
    keys = iter(jax.random.split(key, 64))

    def nrm(shape, std=0.05):
        return jax.random.normal(next(keys), shape, jnp.float32) * std

    def zeros(shape):
        return jnp.zeros(shape, jnp.float32)

    def ones(shape):
        return jnp.ones(shape, jnp.float32)

    p = {}
    # surrogate CLIP vision tower + replaced visual_projection (Linear -> h_dim)
    p["W_patch"] = nrm((PATCH_DIM, DV))
    p["b_patch"] = zeros((1, DV))
    p["ln_g"] = ones((1, DV))
    p["ln_b"] = zeros((1, DV))
    p["W_vproj"] = nrm((DV, H_DIM))
    p["b_vproj"] = zeros((1, H_DIM))
    # Embeddings: Linear(1, h_dim), weight ~ N(0, initrange), bias 0
    p["W_feat"] = nrm((1, H_DIM), 0.1)    # init_range_f = 0.1
    p["b_feat"] = zeros((1, H_DIM))
    p["W_treat"] = nrm((1, H_DIM), 0.1)   # init_range_t = 0.1
    p["b_treat"] = zeros((1, H_DIM))
    # encoder layer
    for nm in ("enc_Wq", "enc_Wk", "enc_Wv", "enc_Wo", "enc_W1", "enc_W2"):
        p[nm] = nrm((H_DIM, H_DIM))
    for nm in ("enc_bq", "enc_bk", "enc_bv", "enc_bo", "enc_b1", "enc_b2"):
        p[nm] = zeros((1, H_DIM))
    p["enc_bn1_g"] = ones((1, NUM_FEATURES))
    p["enc_bn1_b"] = zeros((1, NUM_FEATURES))
    p["enc_bn2_g"] = ones((1, NUM_FEATURES))
    p["enc_bn2_b"] = zeros((1, NUM_FEATURES))
    # decoder layer
    for nm in ("dec_sa_Wq", "dec_sa_Wk", "dec_sa_Wv", "dec_sa_Wo",
               "dec_ca_Wq", "dec_ca_Wk", "dec_ca_Wv", "dec_ca_Wo",
               "dec_W1", "dec_W2"):
        p[nm] = nrm((H_DIM, H_DIM))
    for nm in ("dec_sa_bq", "dec_sa_bk", "dec_sa_bv", "dec_sa_bo",
               "dec_ca_bq", "dec_ca_bk", "dec_ca_bv", "dec_ca_bo",
               "dec_b1", "dec_b2"):
        p[nm] = zeros((1, H_DIM))
    for nm in ("dec_bn1_g", "dec_bn2_g", "dec_bn3_g"):
        p[nm] = ones((1, 1))
    for nm in ("dec_bn1_b", "dec_bn2_b", "dec_bn3_b"):
        p[nm] = zeros((1, 1))
    # Q head: MLP(H -> H -> 1), relu on hidden only
    p["q_W1"] = nrm((H_DIM, H_DIM))
    p["q_b1"] = zeros((1, H_DIM))
    p["q_W2"] = nrm((H_DIM, 1))
    p["q_b2"] = zeros((1, 1))
    return p


# ----------------------------------- main -------------------------------------
if __name__ == "__main__":
    key = jax.random.PRNGKey(0)
    k_img, k_x, k_t, k_p = jax.random.split(key, 4)

    images = jax.random.normal(k_img, (B, C_IMG, IMG, IMG), jnp.float32)  # NCHW
    x = jax.random.normal(k_x, (B, NUM_FEATURES), jnp.float32)
    t = jax.random.randint(k_t, (B,), 0, NUM_TREATMENTS)

    params = init_params(k_p)
    forward = make_transtee_forward(params)   # packs params once, jitted forward

    Q = jax.block_until_ready(forward(images, x, t))
    assert Q.shape == (B, 1) and Q.dtype == jnp.float32
    assert bool(jnp.all(jnp.isfinite(Q)))
    print("KERNEL_OK")
</pallas_src>

<mosaic_0001>
module attributes {stable_mosaic.version = 11 : i64} {
  func.func @_transtee_kernel(%arg0: memref<8xf32, #tpu.memory_space<smem>>, %arg1: memref<10x192xf32, #tpu.memory_space<vmem>>, %arg2: memref<224x32xf32, #tpu.memory_space<vmem>>, %arg3: memref<56x480xf32, #tpu.memory_space<vmem>>, %arg4: memref<2x32xf32, #tpu.memory_space<vmem>>) attributes {dimension_semantics = [], scalar_prefetch = 0 : i64, scratch_operands = 0 : i64, tpu.core_type = #tpu.core_type<tc>} {
    %c32 = arith.constant 32 : index
    %c0 = arith.constant 0 : index
    %0 = vector.load %arg3[%c32, %c0] : memref<56x480xf32, #tpu.memory_space<vmem>>, vector<24x128xf32>
    %c0_0 = arith.constant 0 : index
    %c0_1 = arith.constant 0 : index
    %1 = vector.load %arg1[%c0_0, %c0_1] : memref<10x192xf32, #tpu.memory_space<vmem>>, vector<8x192xf32>
    %c0_2 = arith.constant 0 : index
    %c0_3 = arith.constant 0 : index
    %2 = vector.load %arg2[%c0_2, %c0_3] : memref<224x32xf32, #tpu.memory_space<vmem>>, vector<192x32xf32>
    %cst = arith.constant dense<0.000000e+00> : vector<8x32xf32>
    %3 = tpu.matmul %1, %2, %cst {dimension_numbers = #tpu.dot_dimension_numbers<[1], [0], [0], [1], [0, 0, 1, 1], [], []>} : vector<8x192xf32>, vector<192x32xf32>, vector<8x32xf32> -> vector<8x32xf32>
    %4 = vector.extract_strided_slice %0 {offsets = [0, 0], sizes = [1, 32], strides = [1, 1]} : vector<24x128xf32> to vector<1x32xf32>
    %5 = vector.broadcast %4 : vector<1x32xf32> to vector<8x32xf32>
    %6 = arith.addf %3, %5 : vector<8x32xf32>
    %7 = vector.shape_cast %6 : vector<8x32xf32> to vector<2x4x32xf32>
    %cst_4 = arith.constant dense<0.000000e+00> : vector<2x32xf32>
    %8 = vector.multi_reduction <add>, %7, %cst_4 [1] : vector<2x4x32xf32> to vector<2x32xf32>
    %cst_5 = arith.constant 4.000000e+00 : f32
    %9 = vector.broadcast %cst_5 : f32 to vector<2x32xf32>
    %10 = arith.divf %8, %9 : vector<2x32xf32>
    %cst_6 = arith.constant dense<0.000000e+00> : vector<2xf32>
    %11 = vector.multi_reduction <add>, %10, %cst_6 [1] : vector<2x32xf32> to vector<2xf32>
    %12 = vector.shape_cast %11 : vector<2xf32> to vector<2x1xf32>
    %cst_7 = arith.constant 3.200000e+01 : f32
    %13 = vector.broadcast %cst_7 : f32 to vector<2x1xf32>
    %14 = arith.divf %12, %13 : vector<2x1xf32>
    %15 = arith.mulf %10, %10 : vector<2x32xf32>
    %cst_8 = arith.constant dense<0.000000e+00> : vector<2xf32>
    %16 = vector.multi_reduction <add>, %15, %cst_8 [1] : vector<2x32xf32> to vector<2xf32>
    %17 = vector.shape_cast %16 : vector<2xf32> to vector<2x1xf32>
    %cst_9 = arith.constant 3.200000e+01 : f32
    %18 = vector.broadcast %cst_9 : f32 to vector<2x1xf32>
    %19 = arith.divf %17, %18 : vector<2x1xf32>
    %20 = arith.mulf %14, %14 : vector<2x1xf32>
    %21 = arith.subf %19, %20 : vector<2x1xf32>
    %22 = vector.broadcast %14 : vector<2x1xf32> to vector<2x32xf32>
    %23 = arith.subf %10, %22 : vector<2x32xf32>
    %cst_10 = arith.constant 9.99999974E-6 : f32
    %24 = vector.broadcast %cst_10 : f32 to vector<2x1xf32>
    %25 = arith.addf %21, %24 : vector<2x1xf32>
    %26 = math.rsqrt %25 : vector<2x1xf32>
    %27 = vector.extract_strided_slice %0 {offsets = [1, 0], sizes = [1, 32], strides = [1, 1]} : vector<24x128xf32> to vector<1x32xf32>
    %28 = vector.broadcast %26 : vector<2x1xf32> to vector<2x32xf32>
    %29 = vector.broadcast %27 : vector<1x32xf32> to vector<2x32xf32>
    %30 = arith.mulf %28, %29 : vector<2x32xf32>
    %31 = arith.mulf %23, %30 : vector<2x32xf32>
    %32 = vector.extract_strided_slice %0 {offsets = [2, 0], sizes = [1, 32], strides = [1, 1]} : vector<24x128xf32> to vector<1x32xf32>
    %33 = vector.broadcast %32 : vector<1x32xf32> to vector<2x32xf32>
    %34 = arith.addf %31, %33 : vector<2x32xf32>
    %c192 = arith.constant 192 : index
    %c0_11 = arith.constant 0 : index
    %35 = vector.load %arg2[%c192, %c0_11] : memref<224x32xf32, #tpu.memory_space<vmem>>, vector<32x32xf32>
    %cst_12 = arith.constant dense<0.000000e+00> : vector<2x32xf32>
    %36 = tpu.matmul %34, %35, %cst_12 {dimension_numbers = #tpu.dot_dimension_numbers<[1], [0], [0], [1], [0, 0, 1, 1], [], []>} : vector<2x32xf32>, vector<32x32xf32>, vector<2x32xf32> -> vector<2x32xf32>
    %37 = vector.extract_strided_slice %0 {offsets = [3, 0], sizes = [1, 32], strides = [1, 1]} : vector<24x128xf32> to vector<1x32xf32>
    %38 = vector.broadcast %37 : vector<1x32xf32> to vector<2x32xf32>
    %39 = arith.addf %36, %38 : vector<2x32xf32>
    %c8 = arith.constant 8 : index
    %c0_13 = arith.constant 0 : index
    %40 = vector.load %arg1[%c8, %c0_13] : memref<10x192xf32, #tpu.memory_space<vmem>>, vector<2x8xf32>
    %41 = vector.extract_strided_slice %40 {offsets = [0, 0], sizes = [2, 7], strides = [1, 1]} : vector<2x8xf32> to vector<2x7xf32>
    %42 = vector.extract_strided_slice %40 {offsets = [0, 7], sizes = [2, 1], strides = [1, 1]} : vector<2x8xf32> to vector<2x1xf32>
    %43 = vector.extract_strided_slice %0 {offsets = [4, 0], sizes = [1, 32], strides = [1, 1]} : vector<24x128xf32> to vector<1x32xf32>
    %44 = vector.shape_cast %43 : vector<1x32xf32> to vector<1x1x32xf32>
    %45 = vector.extract_strided_slice %0 {offsets = [5, 0], sizes = [1, 32], strides = [1, 1]} : vector<24x128xf32> to vector<1x32xf32>
    %46 = vector.shape_cast %45 : vector<1x32xf32> to vector<1x1x32xf32>
    %47 = vector.shape_cast %41 : vector<2x7xf32> to vector<2x7x1xf32>
    %48 = vector.broadcast %47 : vector<2x7x1xf32> to vector<2x7x32xf32>
    %49 = vector.broadcast %44 : vector<1x1x32xf32> to vector<2x7x32xf32>
    %50 = arith.mulf %48, %49 : vector<2x7x32xf32>
    %51 = vector.broadcast %46 : vector<1x1x32xf32> to vector<2x7x32xf32>
    %52 = arith.addf %50, %51 : vector<2x7x32xf32>
    %cst_14 = arith.constant 0.000000e+00 : f32
    %53 = vector.broadcast %cst_14 : f32 to vector<2x7x32xf32>
    %54 = arith.maximumf %52, %53 : vector<2x7x32xf32>
    %55 = vector.shape_cast %54 : vector<2x7x32xf32> to vector<14x32xf32>
    %c0_15 = arith.constant 0 : index
    %c0_16 = arith.constant 0 : index
    %56 = vector.load %arg3[%c0_15, %c0_16] : memref<56x480xf32, #tpu.memory_space<vmem>>, vector<32x96xf32>
    %cst_17 = arith.constant dense<0.000000e+00> : vector<14x96xf32>
    %57 = tpu.matmul %55, %56, %cst_17 {dimension_numbers = #tpu.dot_dimension_numbers<[1], [0], [0], [1], [0, 0, 1, 1], [], []>} : vector<14x32xf32>, vector<32x96xf32>, vector<14x96xf32> -> vector<14x96xf32>
    %58 = vector.extract_strided_slice %0 {offsets = [8, 0], sizes = [1, 96], strides = [1, 1]} : vector<24x128xf32> to vector<1x96xf32>
    %59 = vector.broadcast %58 : vector<1x96xf32> to vector<14x96xf32>
    %60 = arith.addf %57, %59 : vector<14x96xf32>
    %61 = vector.extract_strided_slice %60 {offsets = [0, 0], sizes = [14, 32], strides = [1, 1]} : vector<14x96xf32> to vector<14x32xf32>
    %62 = vector.shape_cast %61 : vector<14x32xf32> to vector<2x7x32xf32>
    %63 = vector.extract_strided_slice %60 {offsets = [0, 32], sizes = [14, 32], strides = [1, 1]} : vector<14x96xf32> to vector<14x32xf32>
    %64 = vector.shape_cast %63 : vector<14x32xf32> to vector<2x7x32xf32>
    %65 = vector.extract_strided_slice %60 {offsets = [0, 64], sizes = [14, 32], strides = [1, 1]} : vector<14x96xf32> to vector<14x32xf32>
    %66 = vector.shape_cast %65 : vector<14x32xf32> to vector<2x7x32xf32>
    %c0_18 = arith.constant 0 : index
    %c96 = arith.constant 96 : index
    %67 = vector.load %arg3[%c0_18, %c96] : memref<56x480xf32, #tpu.memory_space<vmem>>, vector<32x32xf32>
    %68 = vector.extract_strided_slice %0 {offsets = [9, 0], sizes = [1, 32], strides = [1, 1]} : vector<24x128xf32> to vector<1x32xf32>
    %69 = vector.extract_strided_slice %62 {offsets = [0, 0, 0], sizes = [2, 7, 16], strides = [1, 1, 1]} : vector<2x7x32xf32> to vector<2x7x16xf32>
    %70 = vector.extract_strided_slice %62 {offsets = [0, 0, 16], sizes = [2, 7, 16], strides = [1, 1, 1]} : vector<2x7x32xf32> to vector<2x7x16xf32>
    %71 = tpu.concatenate %69, %70 in 0 : vector<2x7x16xf32>, vector<2x7x16xf32> -> vector<4x7x16xf32>
    %cst_19 = arith.constant 2.500000e-01 : f32
    %72 = vector.broadcast %cst_19 : f32 to vector<4x7x16xf32>
    %73 = arith.mulf %71, %72 : vector<4x7x16xf32>
    %74 = vector.extract_strided_slice %64 {offsets = [0, 0, 0], sizes = [2, 7, 16], strides = [1, 1, 1]} : vector<2x7x32xf32> to vector<2x7x16xf32>
    %75 = vector.extract_strided_slice %64 {offsets = [0, 0, 16], sizes = [2, 7, 16], strides = [1, 1, 1]} : vector<2x7x32xf32> to vector<2x7x16xf32>
    %76 = tpu.concatenate %74, %75 in 0 : vector<2x7x16xf32>, vector<2x7x16xf32> -> vector<4x7x16xf32>
    %77 = vector.extract_strided_slice %66 {offsets = [0, 0, 0], sizes = [2, 7, 16], strides = [1, 1, 1]} : vector<2x7x32xf32> to vector<2x7x16xf32>
    %78 = vector.extract_strided_slice %66 {offsets = [0, 0, 16], sizes = [2, 7, 16], strides = [1, 1, 1]} : vector<2x7x32xf32> to vector<2x7x16xf32>
    %79 = tpu.concatenate %77, %78 in 0 : vector<2x7x16xf32>, vector<2x7x16xf32> -> vector<4x7x16xf32>
    "tpu.trace_start"() <{level = 10 : i32, message = "bqd,bkd->bqk"}> : () -> ()
    %cst_20 = arith.constant dense<0.000000e+00> : vector<4x7x7xf32>
    %80 = tpu.matmul %73, %76, %cst_20 {dimension_numbers = #tpu.dot_dimension_numbers<[2], [2], [1], [1], [0, 0, 0, 1, 1, 1], [0], [0]>} : vector<4x7x16xf32>, vector<4x7x16xf32>, vector<4x7x7xf32> -> vector<4x7x7xf32>
    "tpu.trace_stop"() : () -> ()
    %81 = math.exp %80 : vector<4x7x7xf32>
    %cst_21 = arith.constant dense<0.000000e+00> : vector<4x7xf32>
    %82 = vector.multi_reduction <add>, %81, %cst_21 [2] : vector<4x7x7xf32> to vector<4x7xf32>
    %83 = vector.shape_cast %82 : vector<4x7xf32> to vector<4x7x1xf32>
    %84 = tpu.reciprocal %83 {approx = true} : vector<4x7x1xf32> -> vector<4x7x1xf32>
    %85 = vector.broadcast %84 : vector<4x7x1xf32> to vector<4x7x7xf32>
    %86 = arith.mulf %81, %85 : vector<4x7x7xf32>
    "tpu.trace_start"() <{level = 10 : i32, message = "bqk,bkd->bqd"}> : () -> ()
    %cst_22 = arith.constant dense<0.000000e+00> : vector<4x7x16xf32>
    %87 = tpu.matmul %86, %79, %cst_22 {dimension_numbers = #tpu.dot_dimension_numbers<[2], [1], [1], [2], [0, 0, 0, 1, 1, 2], [0], [0]>} : vector<4x7x7xf32>, vector<4x7x16xf32>, vector<4x7x16xf32> -> vector<4x7x16xf32>
    "tpu.trace_stop"() : () -> ()
    %88 = vector.extract_strided_slice %87 {offsets = [0, 0, 0], sizes = [2, 7, 16], strides = [1, 1, 1]} : vector<4x7x16xf32> to vector<2x7x16xf32>
    %89 = vector.extract_strided_slice %87 {offsets = [2, 0, 0], sizes = [2, 7, 16], strides = [1, 1, 1]} : vector<4x7x16xf32> to vector<2x7x16xf32>
    %90 = tpu.concatenate %88, %89 in 2 : vector<2x7x16xf32>, vector<2x7x16xf32> -> vector<2x7x32xf32>
    %91 = vector.shape_cast %90 : vector<2x7x32xf32> to vector<14x32xf32>
    %cst_23 = arith.constant dense<0.000000e+00> : vector<14x32xf32>
    %92 = tpu.matmul %91, %67, %cst_23 {dimension_numbers = #tpu.dot_dimension_numbers<[1], [0], [0], [1], [0, 0, 1, 1], [], []>} : vector<14x32xf32>, vector<32x32xf32>, vector<14x32xf32> -> vector<14x32xf32>
    %93 = vector.broadcast %68 : vector<1x32xf32> to vector<14x32xf32>
    %94 = arith.addf %92, %93 : vector<14x32xf32>
    %95 = vector.shape_cast %94 : vector<14x32xf32> to vector<2x7x32xf32>
    %96 = arith.addf %54, %95 : vector<2x7x32xf32>
    %97 = vector.extract_strided_slice %0 {offsets = [12, 0], sizes = [1, 7], strides = [1, 1]} : vector<24x128xf32> to vector<1x7xf32>
    %98 = vector.shape_cast %97 : vector<1x7xf32> to vector<1x7x1xf32>
    %99 = vector.extract_strided_slice %0 {offsets = [13, 0], sizes = [1, 7], strides = [1, 1]} : vector<24x128xf32> to vector<1x7xf32>
    %100 = vector.shape_cast %99 : vector<1x7xf32> to vector<1x7x1xf32>
    %cst_24 = arith.constant dense<0.000000e+00> : vector<2x7xf32>
    %101 = vector.multi_reduction <add>, %96, %cst_24 [2] : vector<2x7x32xf32> to vector<2x7xf32>
    %102 = vector.shape_cast %101 : vector<2x7xf32> to vector<2x7x1xf32>
    %cst_25 = arith.constant dense<0.000000e+00> : vector<7x1xf32>
    %103 = vector.multi_reduction <add>, %102, %cst_25 [0] : vector<2x7x1xf32> to vector<7x1xf32>
    %104 = vector.shape_cast %103 : vector<7x1xf32> to vector<1x7x1xf32>
    %105 = arith.mulf %96, %96 : vector<2x7x32xf32>
    %cst_26 = arith.constant dense<0.000000e+00> : vector<2x7xf32>
    %106 = vector.multi_reduction <add>, %105, %cst_26 [2] : vector<2x7x32xf32> to vector<2x7xf32>
    %107 = vector.shape_cast %106 : vector<2x7xf32> to vector<2x7x1xf32>
    %cst_27 = arith.constant dense<0.000000e+00> : vector<7x1xf32>
    %108 = vector.multi_reduction <add>, %107, %cst_27 [0] : vector<2x7x1xf32> to vector<7x1xf32>
    %109 = vector.shape_cast %108 : vector<7x1xf32> to vector<1x7x1xf32>
    %cst_28 = arith.constant 1.562500e-02 : f32
    %110 = vector.broadcast %cst_28 : f32 to vector<1x7x1xf32>
    %111 = arith.mulf %104, %110 : vector<1x7x1xf32>
    %cst_29 = arith.constant 1.562500e-02 : f32
    %112 = vector.broadcast %cst_29 : f32 to vector<1x7x1xf32>
    %113 = arith.mulf %109, %112 : vector<1x7x1xf32>
    %114 = arith.mulf %111, %111 : vector<1x7x1xf32>
    %115 = arith.subf %113, %114 : vector<1x7x1xf32>
    %116 = vector.broadcast %111 : vector<1x7x1xf32> to vector<2x7x32xf32>
    %117 = arith.subf %96, %116 : vector<2x7x32xf32>
    %cst_30 = arith.constant 9.99999974E-6 : f32
    %118 = vector.broadcast %cst_30 : f32 to vector<1x7x1xf32>
    %119 = arith.addf %115, %118 : vector<1x7x1xf32>
    %120 = math.rsqrt %119 : vector<1x7x1xf32>
    %121 = arith.mulf %120, %98 : vector<1x7x1xf32>
    %122 = vector.broadcast %121 : vector<1x7x1xf32> to vector<2x7x32xf32>
    %123 = arith.mulf %117, %122 : vector<2x7x32xf32>
    %124 = vector.broadcast %100 : vector<1x7x1xf32> to vector<2x7x32xf32>
    %125 = arith.addf %123, %124 : vector<2x7x32xf32>
    %126 = vector.shape_cast %125 : vector<2x7x32xf32> to vector<14x32xf32>
    %c0_31 = arith.constant 0 : index
    %c128 = arith.constant 128 : index
    %127 = vector.load %arg3[%c0_31, %c128] : memref<56x480xf32, #tpu.memory_space<vmem>>, vector<32x32xf32>
    %cst_32 = arith.constant dense<0.000000e+00> : vector<14x32xf32>
    %128 = tpu.matmul %126, %127, %cst_32 {dimension_numbers = #tpu.dot_dimension_numbers<[1], [0], [0], [1], [0, 0, 1, 1], [], []>} : vector<14x32xf32>, vector<32x32xf32>, vector<14x32xf32> -> vector<14x32xf32>
    %129 = vector.extract_strided_slice %0 {offsets = [10, 0], sizes = [1, 32], strides = [1, 1]} : vector<24x128xf32> to vector<1x32xf32>
    %130 = vector.broadcast %129 : vector<1x32xf32> to vector<14x32xf32>
    %131 = arith.addf %128, %130 : vector<14x32xf32>
    %cst_33 = arith.constant 0.000000e+00 : f32
    %132 = vector.broadcast %cst_33 : f32 to vector<14x32xf32>
    %133 = arith.maximumf %131, %132 : vector<14x32xf32>
    %c0_34 = arith.constant 0 : index
    %c160 = arith.constant 160 : index
    %134 = vector.load %arg3[%c0_34, %c160] : memref<56x480xf32, #tpu.memory_space<vmem>>, vector<32x32xf32>
    %cst_35 = arith.constant dense<0.000000e+00> : vector<14x32xf32>
    %135 = tpu.matmul %133, %134, %cst_35 {dimension_numbers = #tpu.dot_dimension_numbers<[1], [0], [0], [1], [0, 0, 1, 1], [], []>} : vector<14x32xf32>, vector<32x32xf32>, vector<14x32xf32> -> vector<14x32xf32>
    %136 = vector.extract_strided_slice %0 {offsets = [11, 0], sizes = [1, 32], strides = [1, 1]} : vector<24x128xf32> to vector<1x32xf32>
    %137 = vector.broadcast %136 : vector<1x32xf32> to vector<14x32xf32>
    %138 = arith.addf %135, %137 : vector<14x32xf32>
    %139 = vector.shape_cast %138 : vector<14x32xf32> to vector<2x7x32xf32>
    %140 = arith.addf %125, %139 : vector<2x7x32xf32>
    %141 = vector.extract_strided_slice %0 {offsets = [14, 0], sizes = [1, 7], strides = [1, 1]} : vector<24x128xf32> to vector<1x7xf32>
    %142 = vector.shape_cast %141 : vector<1x7xf32> to vector<1x7x1xf32>
    %143 = vector.extract_strided_slice %0 {offsets = [15, 0], sizes = [1, 7], strides = [1, 1]} : vector<24x128xf32> to vector<1x7xf32>
    %144 = vector.shape_cast %143 : vector<1x7xf32> to vector<1x7x1xf32>
    %cst_36 = arith.constant dense<0.000000e+00> : vector<2x7xf32>
    %145 = vector.multi_reduction <add>, %140, %cst_36 [2] : vector<2x7x32xf32> to vector<2x7xf32>
    %146 = vector.shape_cast %145 : vector<2x7xf32> to vector<2x7x1xf32>
    %cst_37 = arith.constant dense<0.000000e+00> : vector<7x1xf32>
    %147 = vector.multi_reduction <add>, %146, %cst_37 [0] : vector<2x7x1xf32> to vector<7x1xf32>
    %148 = vector.shape_cast %147 : vector<7x1xf32> to vector<1x7x1xf32>
    %149 = arith.mulf %140, %140 : vector<2x7x32xf32>
    %cst_38 = arith.constant dense<0.000000e+00> : vector<2x7xf32>
    %150 = vector.multi_reduction <add>, %149, %cst_38 [2] : vector<2x7x32xf32> to vector<2x7xf32>
    %151 = vector.shape_cast %150 : vector<2x7xf32> to vector<2x7x1xf32>
    %cst_39 = arith.constant dense<0.000000e+00> : vector<7x1xf32>
    %152 = vector.multi_reduction <add>, %151, %cst_39 [0] : vector<2x7x1xf32> to vector<7x1xf32>
    %153 = vector.shape_cast %152 : vector<7x1xf32> to vector<1x7x1xf32>
    %cst_40 = arith.constant 1.562500e-02 : f32
    %154 = vector.broadcast %cst_40 : f32 to vector<1x7x1xf32>
    %155 = arith.mulf %148, %154 : vector<1x7x1xf32>
    %cst_41 = arith.constant 1.562500e-02 : f32
    %156 = vector.broadcast %cst_41 : f32 to vector<1x7x1xf32>
    %157 = arith.mulf %153, %156 : vector<1x7x1xf32>
    %158 = arith.mulf %155, %155 : vector<1x7x1xf32>
    %159 = arith.subf %157, %158 : vector<1x7x1xf32>
    %160 = vector.broadcast %155 : vector<1x7x1xf32> to vector<2x7x32xf32>
    %161 = arith.subf %140, %160 : vector<2x7x32xf32>
    %cst_42 = arith.constant 9.99999974E-6 : f32
    %162 = vector.broadcast %cst_42 : f32 to vector<1x7x1xf32>
    %163 = arith.addf %159, %162 : vector<1x7x1xf32>
    %164 = math.rsqrt %163 : vector<1x7x1xf32>
    %165 = arith.mulf %164, %142 : vector<1x7x1xf32>
    %166 = vector.broadcast %165 : vector<1x7x1xf32> to vector<2x7x32xf32>
    %167 = arith.mulf %161, %166 : vector<2x7x32xf32>
    %168 = vector.broadcast %144 : vector<1x7x1xf32> to vector<2x7x32xf32>
    %169 = arith.addf %167, %168 : vector<2x7x32xf32>
    %170 = vector.shape_cast %39 : vector<2x32xf32> to vector<2x1x32xf32>
    %171 = tpu.concatenate %170, %169 in 1 : vector<2x1x32xf32>, vector<2x7x32xf32> -> vector<2x8x32xf32>
    %172 = vector.extract_strided_slice %0 {offsets = [6, 0], sizes = [1, 32], strides = [1, 1]} : vector<24x128xf32> to vector<1x32xf32>
    %173 = vector.shape_cast %172 : vector<1x32xf32> to vector<1x1x32xf32>
    %174 = vector.extract_strided_slice %0 {offsets = [7, 0], sizes = [1, 32], strides = [1, 1]} : vector<24x128xf32> to vector<1x32xf32>
    %175 = vector.shape_cast %174 : vector<1x32xf32> to vector<1x1x32xf32>
    %176 = vector.shape_cast %42 : vector<2x1xf32> to vector<2x1x1xf32>
    %177 = vector.broadcast %176 : vector<2x1x1xf32> to vector<2x1x32xf32>
    %178 = vector.broadcast %173 : vector<1x1x32xf32> to vector<2x1x32xf32>
    %179 = arith.mulf %177, %178 : vector<2x1x32xf32>
    %180 = vector.broadcast %175 : vector<1x1x32xf32> to vector<2x1x32xf32>
    %181 = arith.addf %179, %180 : vector<2x1x32xf32>
    %182 = vector.shape_cast %181 : vector<2x1x32xf32> to vector<2x32xf32>
    %c0_43 = arith.constant 0 : index
    %c192_44 = arith.constant 192 : index
    %183 = vector.load %arg3[%c0_43, %c192_44] : memref<56x480xf32, #tpu.memory_space<vmem>>, vector<32x32xf32>
    %cst_45 = arith.constant dense<0.000000e+00> : vector<2x32xf32>
    %184 = tpu.matmul %182, %183, %cst_45 {dimension_numbers = #tpu.dot_dimension_numbers<[1], [0], [0], [1], [0, 0, 1, 1], [], []>} : vector<2x32xf32>, vector<32x32xf32>, vector<2x32xf32> -> vector<2x32xf32>
    %185 = vector.extract_strided_slice %0 {offsets = [16, 0], sizes = [1, 32], strides = [1, 1]} : vector<24x128xf32> to vector<1x32xf32>
    %186 = vector.broadcast %185 : vector<1x32xf32> to vector<2x32xf32>
    %187 = arith.addf %184, %186 : vector<2x32xf32>
    %188 = vector.shape_cast %187 : vector<2x32xf32> to vector<2x1x32xf32>
    %189 = arith.addf %181, %188 : vector<2x1x32xf32>
    %c0_46 = arith.constant 0 : index
    %190 = memref.load %arg0[%c0_46] : memref<8xf32, #tpu.memory_space<smem>>
    %c1 = arith.constant 1 : index
    %191 = memref.load %arg0[%c1] : memref<8xf32, #tpu.memory_space<smem>>
    %cst_47 = arith.constant dense<0.000000e+00> : vector<2x1xf32>
    %192 = vector.multi_reduction <add>, %189, %cst_47 [2] : vector<2x1x32xf32> to vector<2x1xf32>
    %193 = vector.shape_cast %192 : vector<2x1xf32> to vector<2x1x1xf32>
    %cst_48 = arith.constant dense<0.000000e+00> : vector<1x1xf32>
    %194 = vector.multi_reduction <add>, %193, %cst_48 [0] : vector<2x1x1xf32> to vector<1x1xf32>
    %195 = vector.shape_cast %194 : vector<1x1xf32> to vector<1x1x1xf32>
    %196 = arith.mulf %189, %189 : vector<2x1x32xf32>
    %cst_49 = arith.constant dense<0.000000e+00> : vector<2x1xf32>
    %197 = vector.multi_reduction <add>, %196, %cst_49 [2] : vector<2x1x32xf32> to vector<2x1xf32>
    %198 = vector.shape_cast %197 : vector<2x1xf32> to vector<2x1x1xf32>
    %cst_50 = arith.constant dense<0.000000e+00> : vector<1x1xf32>
    %199 = vector.multi_reduction <add>, %198, %cst_50 [0] : vector<2x1x1xf32> to vector<1x1xf32>
    %200 = vector.shape_cast %199 : vector<1x1xf32> to vector<1x1x1xf32>
    %cst_51 = arith.constant 1.562500e-02 : f32
    %201 = vector.broadcast %cst_51 : f32 to vector<1x1x1xf32>
    %202 = arith.mulf %195, %201 : vector<1x1x1xf32>
    %cst_52 = arith.constant 1.562500e-02 : f32
    %203 = vector.broadcast %cst_52 : f32 to vector<1x1x1xf32>
    %204 = arith.mulf %200, %203 : vector<1x1x1xf32>
    %205 = arith.mulf %202, %202 : vector<1x1x1xf32>
    %206 = arith.subf %204, %205 : vector<1x1x1xf32>
    %207 = vector.broadcast %202 : vector<1x1x1xf32> to vector<2x1x32xf32>
    %208 = arith.subf %189, %207 : vector<2x1x32xf32>
    %cst_53 = arith.constant 9.99999974E-6 : f32
    %209 = vector.broadcast %cst_53 : f32 to vector<1x1x1xf32>
    %210 = arith.addf %206, %209 : vector<1x1x1xf32>
    %211 = math.rsqrt %210 : vector<1x1x1xf32>
    %212 = vector.broadcast %190 : f32 to vector<1x1x1xf32>
    %213 = arith.mulf %211, %212 : vector<1x1x1xf32>
    %214 = vector.broadcast %213 : vector<1x1x1xf32> to vector<2x1x32xf32>
    %215 = arith.mulf %208, %214 : vector<2x1x32xf32>
    %216 = vector.broadcast %191 : f32 to vector<2x1x32xf32>
    %217 = arith.addf %215, %216 : vector<2x1x32xf32>
    %218 = vector.shape_cast %217 : vector<2x1x32xf32> to vector<2x32xf32>
    %c0_54 = arith.constant 0 : index
    %c224 = arith.constant 224 : index
    %219 = vector.load %arg3[%c0_54, %c224] : memref<56x480xf32, #tpu.memory_space<vmem>>, vector<32x32xf32>
    %cst_55 = arith.constant dense<0.000000e+00> : vector<2x32xf32>
    %220 = tpu.matmul %218, %219, %cst_55 {dimension_numbers = #tpu.dot_dimension_numbers<[1], [0], [0], [1], [0, 0, 1, 1], [], []>} : vector<2x32xf32>, vector<32x32xf32>, vector<2x32xf32> -> vector<2x32xf32>
    %221 = vector.extract_strided_slice %0 {offsets = [17, 0], sizes = [1, 32], strides = [1, 1]} : vector<24x128xf32> to vector<1x32xf32>
    %222 = vector.broadcast %221 : vector<1x32xf32> to vector<2x32xf32>
    %223 = arith.addf %220, %222 : vector<2x32xf32>
    %224 = vector.shape_cast %223 : vector<2x32xf32> to vector<2x1x32xf32>
    %225 = vector.shape_cast %171 : vector<2x8x32xf32> to vector<16x32xf32>
    %c0_56 = arith.constant 0 : index
    %c256 = arith.constant 256 : index
    %226 = vector.load %arg3[%c0_56, %c256] : memref<56x480xf32, #tpu.memory_space<vmem>>, vector<32x64xf32>
    %cst_57 = arith.constant dense<0.000000e+00> : vector<16x64xf32>
    %227 = tpu.matmul %225, %226, %cst_57 {dimension_numbers = #tpu.dot_dimension_numbers<[1], [0], [0], [1], [0, 0, 1, 1], [], []>} : vector<16x32xf32>, vector<32x64xf32>, vector<16x64xf32> -> vector<16x64xf32>
    %228 = vector.extract_strided_slice %0 {offsets = [18, 0], sizes = [1, 64], strides = [1, 1]} : vector<24x128xf32> to vector<1x64xf32>
    %229 = vector.broadcast %228 : vector<1x64xf32> to vector<16x64xf32>
    %230 = arith.addf %227, %229 : vector<16x64xf32>
    %231 = vector.extract_strided_slice %230 {offsets = [0, 0], sizes = [16, 32], strides = [1, 1]} : vector<16x64xf32> to vector<16x32xf32>
    %232 = vector.shape_cast %231 : vector<16x32xf32> to vector<2x8x32xf32>
    %233 = vector.extract_strided_slice %230 {offsets = [0, 32], sizes = [16, 32], strides = [1, 1]} : vector<16x64xf32> to vector<16x32xf32>
    %234 = vector.shape_cast %233 : vector<16x32xf32> to vector<2x8x32xf32>
    %c0_58 = arith.constant 0 : index
    %c320 = arith.constant 320 : index
    %235 = vector.load %arg3[%c0_58, %c320] : memref<56x480xf32, #tpu.memory_space<vmem>>, vector<32x32xf32>
    %236 = vector.extract_strided_slice %0 {offsets = [19, 0], sizes = [1, 32], strides = [1, 1]} : vector<24x128xf32> to vector<1x32xf32>
    %237 = vector.extract_strided_slice %224 {offsets = [0, 0, 0], sizes = [2, 1, 16], strides = [1, 1, 1]} : vector<2x1x32xf32> to vector<2x1x16xf32>
    %238 = vector.extract_strided_slice %224 {offsets = [0, 0, 16], sizes = [2, 1, 16], strides = [1, 1, 1]} : vector<2x1x32xf32> to vector<2x1x16xf32>
    %239 = tpu.concatenate %237, %238 in 0 : vector<2x1x16xf32>, vector<2x1x16xf32> -> vector<4x1x16xf32>
    %cst_59 = arith.constant 2.500000e-01 : f32
    %240 = vector.broadcast %cst_59 : f32 to vector<4x1x16xf32>
    %241 = arith.mulf %239, %240 : vector<4x1x16xf32>
    %242 = vector.extract_strided_slice %232 {offsets = [0, 0, 0], sizes = [2, 8, 16], strides = [1, 1, 1]} : vector<2x8x32xf32> to vector<2x8x16xf32>
    %243 = vector.extract_strided_slice %232 {offsets = [0, 0, 16], sizes = [2, 8, 16], strides = [1, 1, 1]} : vector<2x8x32xf32> to vector<2x8x16xf32>
    %244 = tpu.concatenate %242, %243 in 0 : vector<2x8x16xf32>, vector<2x8x16xf32> -> vector<4x8x16xf32>
    %245 = vector.extract_strided_slice %234 {offsets = [0, 0, 0], sizes = [2, 8, 16], strides = [1, 1, 1]} : vector<2x8x32xf32> to vector<2x8x16xf32>
    %246 = vector.extract_strided_slice %234 {offsets = [0, 0, 16], sizes = [2, 8, 16], strides = [1, 1, 1]} : vector<2x8x32xf32> to vector<2x8x16xf32>
    %247 = tpu.concatenate %245, %246 in 0 : vector<2x8x16xf32>, vector<2x8x16xf32> -> vector<4x8x16xf32>
    "tpu.trace_start"() <{level = 10 : i32, message = "bqd,bkd->bqk"}> : () -> ()
    %cst_60 = arith.constant dense<0.000000e+00> : vector<4x1x8xf32>
    %248 = tpu.matmul %241, %244, %cst_60 {dimension_numbers = #tpu.dot_dimension_numbers<[2], [2], [1], [1], [0, 0, 0, 1, 1, 1], [0], [0]>} : vector<4x1x16xf32>, vector<4x8x16xf32>, vector<4x1x8xf32> -> vector<4x1x8xf32>
    "tpu.trace_stop"() : () -> ()
    %249 = math.exp %248 : vector<4x1x8xf32>
    %cst_61 = arith.constant dense<0.000000e+00> : vector<4x1xf32>
    %250 = vector.multi_reduction <add>, %249, %cst_61 [2] : vector<4x1x8xf32> to vector<4x1xf32>
    %251 = vector.shape_cast %250 : vector<4x1xf32> to vector<4x1x1xf32>
    %252 = tpu.reciprocal %251 {approx = true} : vector<4x1x1xf32> -> vector<4x1x1xf32>
    %253 = vector.broadcast %252 : vector<4x1x1xf32> to vector<4x1x8xf32>
    %254 = arith.mulf %249, %253 : vector<4x1x8xf32>
    "tpu.trace_start"() <{level = 10 : i32, message = "bqk,bkd->bqd"}> : () -> ()
    %cst_62 = arith.constant dense<0.000000e+00> : vector<4x1x16xf32>
    %255 = tpu.matmul %254, %247, %cst_62 {dimension_numbers = #tpu.dot_dimension_numbers<[2], [1], [1], [2], [0, 0, 0, 1, 1, 2], [0], [0]>} : vector<4x1x8xf32>, vector<4x8x16xf32>, vector<4x1x16xf32> -> vector<4x1x16xf32>
    "tpu.trace_stop"() : () -> ()
    %256 = vector.extract_strided_slice %255 {offsets = [0, 0, 0], sizes = [2, 1, 16], strides = [1, 1, 1]} : vector<4x1x16xf32> to vector<2x1x16xf32>
    %257 = vector.extract_strided_slice %255 {offsets = [2, 0, 0], sizes = [2, 1, 16], strides = [1, 1, 1]} : vector<4x1x16xf32> to vector<2x1x16xf32>
    %258 = tpu.concatenate %256, %257 in 2 : vector<2x1x16xf32>, vector<2x1x16xf32> -> vector<2x1x32xf32>
    %259 = vector.shape_cast %258 : vector<2x1x32xf32> to vector<2x32xf32>
    %cst_63 = arith.constant dense<0.000000e+00> : vector<2x32xf32>
    %260 = tpu.matmul %259, %235, %cst_63 {dimension_numbers = #tpu.dot_dimension_numbers<[1], [0], [0], [1], [0, 0, 1, 1], [], []>} : vector<2x32xf32>, vector<32x32xf32>, vector<2x32xf32> -> vector<2x32xf32>
    %261 = vector.broadcast %236 : vector<1x32xf32> to vector<2x32xf32>
    %262 = arith.addf %260, %261 : vector<2x32xf32>
    %263 = vector.shape_cast %262 : vector<2x32xf32> to vector<2x1x32xf32>
    %264 = arith.addf %217, %263 : vector<2x1x32xf32>
    %c2 = arith.constant 2 : index
    %265 = memref.load %arg0[%c2] : memref<8xf32, #tpu.memory_space<smem>>
    %c3 = arith.constant 3 : index
    %266 = memref.load %arg0[%c3] : memref<8xf32, #tpu.memory_space<smem>>
    %cst_64 = arith.constant dense<0.000000e+00> : vector<2x1xf32>
    %267 = vector.multi_reduction <add>, %264, %cst_64 [2] : vector<2x1x32xf32> to vector<2x1xf32>
    %268 = vector.shape_cast %267 : vector<2x1xf32> to vector<2x1x1xf32>
    %cst_65 = arith.constant dense<0.000000e+00> : vector<1x1xf32>
    %269 = vector.multi_reduction <add>, %268, %cst_65 [0] : vector<2x1x1xf32> to vector<1x1xf32>
    %270 = vector.shape_cast %269 : vector<1x1xf32> to vector<1x1x1xf32>
    %271 = arith.mulf %264, %264 : vector<2x1x32xf32>
    %cst_66 = arith.constant dense<0.000000e+00> : vector<2x1xf32>
    %272 = vector.multi_reduction <add>, %271, %cst_66 [2] : vector<2x1x32xf32> to vector<2x1xf32>
    %273 = vector.shape_cast %272 : vector<2x1xf32> to vector<2x1x1xf32>
    %cst_67 = arith.constant dense<0.000000e+00> : vector<1x1xf32>
    %274 = vector.multi_reduction <add>, %273, %cst_67 [0] : vector<2x1x1xf32> to vector<1x1xf32>
    %275 = vector.shape_cast %274 : vector<1x1xf32> to vector<1x1x1xf32>
    %cst_68 = arith.constant 1.562500e-02 : f32
    %276 = vector.broadcast %cst_68 : f32 to vector<1x1x1xf32>
    %277 = arith.mulf %270, %276 : vector<1x1x1xf32>
    %cst_69 = arith.constant 1.562500e-02 : f32
    %278 = vector.broadcast %cst_69 : f32 to vector<1x1x1xf32>
    %279 = arith.mulf %275, %278 : vector<1x1x1xf32>
    %280 = arith.mulf %277, %277 : vector<1x1x1xf32>
    %281 = arith.subf %279, %280 : vector<1x1x1xf32>
    %282 = vector.broadcast %277 : vector<1x1x1xf32> to vector<2x1x32xf32>
    %283 = arith.subf %264, %282 : vector<2x1x32xf32>
    %cst_70 = arith.constant 9.99999974E-6 : f32
    %284 = vector.broadcast %cst_70 : f32 to vector<1x1x1xf32>
    %285 = arith.addf %281, %284 : vector<1x1x1xf32>
    %286 = math.rsqrt %285 : vector<1x1x1xf32>
    %287 = vector.broadcast %265 : f32 to vector<1x1x1xf32>
    %288 = arith.mulf %286, %287 : vector<1x1x1xf32>
    %289 = vector.broadcast %288 : vector<1x1x1xf32> to vector<2x1x32xf32>
    %290 = arith.mulf %283, %289 : vector<2x1x32xf32>
    %291 = vector.broadcast %266 : f32 to vector<2x1x32xf32>
    %292 = arith.addf %290, %291 : vector<2x1x32xf32>
    %293 = vector.shape_cast %292 : vector<2x1x32xf32> to vector<2x32xf32>
    %c0_71 = arith.constant 0 : index
    %c352 = arith.constant 352 : index
    %294 = vector.load %arg3[%c0_71, %c352] : memref<56x480xf32, #tpu.memory_space<vmem>>, vector<32x32xf32>
    %cst_72 = arith.constant dense<0.000000e+00> : vector<2x32xf32>
    %295 = tpu.matmul %293, %294, %cst_72 {dimension_numbers = #tpu.dot_dimension_numbers<[1], [0], [0], [1], [0, 0, 1, 1], [], []>} : vector<2x32xf32>, vector<32x32xf32>, vector<2x32xf32> -> vector<2x32xf32>
    %296 = vector.extract_strided_slice %0 {offsets = [20, 0], sizes = [1, 32], strides = [1, 1]} : vector<24x128xf32> to vector<1x32xf32>
    %297 = vector.broadcast %296 : vector<1x32xf32> to vector<2x32xf32>
    %298 = arith.addf %295, %297 : vector<2x32xf32>
    %cst_73 = arith.constant 0.000000e+00 : f32
    %299 = vector.broadcast %cst_73 : f32 to vector<2x32xf32>
    %300 = arith.maximumf %298, %299 : vector<2x32xf32>
    %c0_74 = arith.constant 0 : index
    %c384 = arith.constant 384 : index
    %301 = vector.load %arg3[%c0_74, %c384] : memref<56x480xf32, #tpu.memory_space<vmem>>, vector<32x32xf32>
    %cst_75 = arith.constant dense<0.000000e+00> : vector<2x32xf32>
    %302 = tpu.matmul %300, %301, %cst_75 {dimension_numbers = #tpu.dot_dimension_numbers<[1], [0], [0], [1], [0, 0, 1, 1], [], []>} : vector<2x32xf32>, vector<32x32xf32>, vector<2x32xf32> -> vector<2x32xf32>
    %303 = vector.extract_strided_slice %0 {offsets = [21, 0], sizes = [1, 32], strides = [1, 1]} : vector<24x128xf32> to vector<1x32xf32>
    %304 = vector.broadcast %303 : vector<1x32xf32> to vector<2x32xf32>
    %305 = arith.addf %302, %304 : vector<2x32xf32>
    %306 = vector.shape_cast %305 : vector<2x32xf32> to vector<2x1x32xf32>
    %307 = arith.addf %292, %306 : vector<2x1x32xf32>
    %c4 = arith.constant 4 : index
    %308 = memref.load %arg0[%c4] : memref<8xf32, #tpu.memory_space<smem>>
    %c5 = arith.constant 5 : index
    %309 = memref.load %arg0[%c5] : memref<8xf32, #tpu.memory_space<smem>>
    %cst_76 = arith.constant dense<0.000000e+00> : vector<2x1xf32>
    %310 = vector.multi_reduction <add>, %307, %cst_76 [2] : vector<2x1x32xf32> to vector<2x1xf32>
    %311 = vector.shape_cast %310 : vector<2x1xf32> to vector<2x1x1xf32>
    %cst_77 = arith.constant dense<0.000000e+00> : vector<1x1xf32>
    %312 = vector.multi_reduction <add>, %311, %cst_77 [0] : vector<2x1x1xf32> to vector<1x1xf32>
    %313 = vector.shape_cast %312 : vector<1x1xf32> to vector<1x1x1xf32>
    %314 = arith.mulf %307, %307 : vector<2x1x32xf32>
    %cst_78 = arith.constant dense<0.000000e+00> : vector<2x1xf32>
    %315 = vector.multi_reduction <add>, %314, %cst_78 [2] : vector<2x1x32xf32> to vector<2x1xf32>
    %316 = vector.shape_cast %315 : vector<2x1xf32> to vector<2x1x1xf32>
    %cst_79 = arith.constant dense<0.000000e+00> : vector<1x1xf32>
    %317 = vector.multi_reduction <add>, %316, %cst_79 [0] : vector<2x1x1xf32> to vector<1x1xf32>
    %318 = vector.shape_cast %317 : vector<1x1xf32> to vector<1x1x1xf32>
    %cst_80 = arith.constant 1.562500e-02 : f32
    %319 = vector.broadcast %cst_80 : f32 to vector<1x1x1xf32>
    %320 = arith.mulf %313, %319 : vector<1x1x1xf32>
    %cst_81 = arith.constant 1.562500e-02 : f32
    %321 = vector.broadcast %cst_81 : f32 to vector<1x1x1xf32>
    %322 = arith.mulf %318, %321 : vector<1x1x1xf32>
    %323 = arith.mulf %320, %320 : vector<1x1x1xf32>
    %324 = arith.subf %322, %323 : vector<1x1x1xf32>
    %325 = vector.broadcast %320 : vector<1x1x1xf32> to vector<2x1x32xf32>
    %326 = arith.subf %307, %325 : vector<2x1x32xf32>
    %cst_82 = arith.constant 9.99999974E-6 : f32
    %327 = vector.broadcast %cst_82 : f32 to vector<1x1x1xf32>
    %328 = arith.addf %324, %327 : vector<1x1x1xf32>
    %329 = math.rsqrt %328 : vector<1x1x1xf32>
    %330 = vector.broadcast %308 : f32 to vector<1x1x1xf32>
    %331 = arith.mulf %329, %330 : vector<1x1x1xf32>
    %332 = vector.broadcast %331 : vector<1x1x1xf32> to vector<2x1x32xf32>
    %333 = arith.mulf %326, %332 : vector<2x1x32xf32>
    %334 = vector.broadcast %309 : f32 to vector<2x1x32xf32>
    %335 = arith.addf %333, %334 : vector<2x1x32xf32>
    %336 = vector.shape_cast %335 : vector<2x1x32xf32> to vector<2x32xf32>
    %c0_83 = arith.constant 0 : index
    %c416 = arith.constant 416 : index
    %337 = vector.load %arg3[%c0_83, %c416] : memref<56x480xf32, #tpu.memory_space<vmem>>, vector<32x32xf32>
    %cst_84 = arith.constant dense<0.000000e+00> : vector<2x32xf32>
    %338 = tpu.matmul %336, %337, %cst_84 {dimension_numbers = #tpu.dot_dimension_numbers<[1], [0], [0], [1], [0, 0, 1, 1], [], []>} : vector<2x32xf32>, vector<32x32xf32>, vector<2x32xf32> -> vector<2x32xf32>
    %339 = vector.extract_strided_slice %0 {offsets = [22, 0], sizes = [1, 32], strides = [1, 1]} : vector<24x128xf32> to vector<1x32xf32>
    %340 = vector.broadcast %339 : vector<1x32xf32> to vector<2x32xf32>
    %341 = arith.addf %338, %340 : vector<2x32xf32>
    %cst_85 = arith.constant 0.000000e+00 : f32
    %342 = vector.broadcast %cst_85 : f32 to vector<2x32xf32>
    %343 = arith.maximumf %341, %342 : vector<2x32xf32>
    %c0_86 = arith.constant 0 : index
    %c448 = arith.constant 448 : index
    %344 = vector.load %arg3[%c0_86, %c448] : memref<56x480xf32, #tpu.memory_space<vmem>>, vector<32x32xf32>
    %cst_87 = arith.constant dense<0.000000e+00> : vector<2x32xf32>
    %345 = tpu.matmul %343, %344, %cst_87 {dimension_numbers = #tpu.dot_dimension_numbers<[1], [0], [0], [1], [0, 0, 1, 1], [], []>} : vector<2x32xf32>, vector<32x32xf32>, vector<2x32xf32> -> vector<2x32xf32>
    %c6 = arith.constant 6 : index
    %346 = memref.load %arg0[%c6] : memref<8xf32, #tpu.memory_space<smem>>
    %347 = vector.broadcast %346 : f32 to vector<2x32xf32>
    %348 = arith.addf %345, %347 : vector<2x32xf32>
    %c0_88 = arith.constant 0 : index
    %c0_89 = arith.constant 0 : index
    %349 = vector.load %arg4[%c0_88, %c0_89] : memref<2x32xf32, #tpu.memory_space<vmem>>, vector<2x32xf32>
    tpu.vector_store %arg4[%c0_88, %c0_89], %348 {strides = array<i32>} : memref<2x32xf32, #tpu.memory_space<vmem>>, vector<2x32xf32>,
    return
  }
}

</mosaic_0001>

<bundles_post_ra>
// kernel: _forward_packed.1
= control target key start
LH: loop header
LB: loop body
LE: loop exit
PB: predicated region body
PF: predicated region fallthrough
CT: control target
= control target key end

     0   :  { %9 = vsyncpa [#allocation3], 0  ;;  %s6358_s0 = inlined_call_operand.vmem [shape: f32[8], index: 0, kind: input, shape index: {}]   ;;  %s6359_s1 = inlined_call_operand.vmem [shape: f32[10,192], index: 1, kind: input, shape index: {}]   ;;  %s6360_s2 = inlined_call_operand.vmem [shape: f32[224,32], index: 2, kind: input, shape index: {}]   ;;  %s6361_s3 = inlined_call_operand.vmem [shape: f32[56,480], index: 3, kind: input, shape index: {}]   ;;  %s6362_s4 = inlined_call_operand.vmem [shape: f32[2,32], index: 4, kind: output, shape index: {}]  }
   0x1   :  { %s16_s17 = sshll.u32 %s6358_s0, 4  ;;  %s17_s17 = int_to_ptr.vmem [resolvable:$true] %s16_s17 }
   0x2   :  { %s5401_s18 = scalar_lea.vmem %s17_s17, 16  ;;  %p5406_p1 = scmp.lt.s32.totalorder %s17_s17, %s17_s17 }
   0x3   :  { %p5402_p0 = scmp.ne.s32.totalorder %s17_s17, %s5401_s18  ;;  %p5407_p2 = scmp.lt.s32.totalorder %s5401_s18, %s5401_s18 }
   0x5   :  { %p5408_p3 = por %p5407_p2, %p5406_p1 }
   0x7   :  { %p5409_p4 = pnand %p5408_p3, %p5402_p0 }
   0x9   :  { %5412 = shalt.err (!%p5409_p4)
}
   0xa   :  { %s5415_s19 = smov [#allocation2]  }
   0xb   :  { %19 = dma.vmem_to_smem %s17_s17, 16, %s5415_s19, [#allocation3]  }
   0xc   :  { %5413 = dma.done.wait [#allocation3], 16  }
   0xd   :  { %5414 = vsyncadd [#allocation3], 4294967280 }
   0xe   :  { %29 = sfence }
   0xf   :  { %v35_v0 = vld [vmem:[%s6360_s2] sm:$0xff]  ;;  %v36_v1 = vld [vmem:[%s6360_s2 + $0x8] sm:$0xff]  ;;  %v37_v2 = vld [vmem:[%s6360_s2 + $0x10] sm:$0xff]  ;;  %v5416_v3 = vmov 0.0|0.0   ;;  %vm63_vm0 = vcmask 523264   ;;  %v59_v39 = vlaneseq  ;;  %vm140_vm1 = vcmask 257024  }
  0x10   :  { %5136 = vmatprep.subr.bf16.mxu0 %v5416_v3  ;;  %v5137_v4 = vpack.c.bf16 %v36_v1, %v35_v0  ;;  %v38_v5 = vld [vmem:[%s6360_s2 + $0x18] sm:$0xff]  ;;  %5172 = vmatprep.subr.bf16.mxu1 %v5416_v3  ;;  %v39_v7 = vld [vmem:[%s6360_s2 + $0x20] sm:$0xff]  ;;  %v40_v8 = vld [vmem:[%s6360_s2 + $0x28] sm:$0xff]  ;;  %vm160_vm2 = vcmask 1041409   ;;  %vm163_vm3 = vcmask 254976   ;;  %vm5417_vm4 = vmmov 0  }
  0x11   :  { %v5140_v6 = vpack.c.bf16 %v38_v5, %v37_v2  ;;  %v5143_v9 = vpack.c.bf16 %v40_v8, %v39_v7  ;;  %v41_v10 = vld [vmem:[%s6360_s2 + $0x30] sm:$0xff]  ;;  %v42_v11 = vld [vmem:[%s6360_s2 + $0x38] sm:$0xff]  ;;  %v34_v12 = vld [vmem:[%s6359_s1 + $0x8] sm:$0xff]  ;;  %v5545_v40 = vshrl.u32 %v59_v39, 7  ;;  %vm218_vm5 = vcmask 261120   ;;  %s5420_s12 = smov 112  }
  0x12   :  { %5138 = vmatpush1.bf16.msra.mxu0 %v5137_v4  ;;  %4752 = vmatprep.mubr.msk.f32.mxu0 %vm63_vm0, %v34_v12  ;;  %v5146_v13 = vpack.c.bf16 %v42_v11, %v41_v10  ;;  %v43_v14 = vld [vmem:[%s6360_s2 + $0x40] sm:$0xff]  ;;  %v44_v15 = vld [vmem:[%s6360_s2 + $0x48] sm:$0xff]  ;;  %v45_v17 = vld [vmem:[%s6360_s2 + $0x50] sm:$0xff]  ;;  %s5421_s13 = smov 96   ;;  %vm885_vm6 = vcmask 130048   ;;  %s5422_s14 = smov 64  }
  0x13   :  { %5139 = vmatprep.subr.bf16.mxu0 %v5416_v3  ;;  %v5149_v16 = vpack.c.bf16 %v44_v15, %v43_v14  ;;  %v46_v18 = vld [vmem:[%s6360_s2 + $0x58] sm:$0xff]  ;;  %v47_v20 = vld [vmem:[%s6360_s2 + $0x60] sm:$0xff]  ;;  %v48_v21 = vld [vmem:[%s6360_s2 + $0x68] sm:$0xff]  ;;  %v5548_v41 = vsub.s32 0, %v5545_v40  ;;  %v5554_v43 = vsub.s32 1, %v5545_v40  ;;  %vm1532_vm7 = vcmask 1046528  }
  0x14   :  { %v5152_v19 = vpack.c.bf16 %v46_v18, %v45_v17  ;;  %v5155_v22 = vpack.c.bf16 %v48_v21, %v47_v20  ;;  %v49_v23 = vld [vmem:[%s6360_s2 + $0x70] sm:$0xff]  ;;  %v50_v24 = vld [vmem:[%s6360_s2 + $0x78] sm:$0xff]  ;;  %v51_v26 = vld [vmem:[%s6360_s2 + $0x80] sm:$0xff]  ;;  %v5610_v21 = vsub.s32 4, %v5545_v40  ;;  %vm1505_vm8 = vcmask 55296   ;;  %s5423_s15 = smov 16  }
  0x15   :  { %v5158_v25 = vpack.c.bf16 %v50_v24, %v49_v23  ;;  %v52_v27 = vld [vmem:[%s6360_s2 + $0x88] sm:$0xff]  ;;  %v53_v29 = vld [vmem:[%s6360_s2 + $0x90] sm:$0xff]  ;;  %v54_v30 = vld [vmem:[%s6360_s2 + $0x98] sm:$0xff]  ;;  %vm1528_vm9 = vcmask 56320   ;;  %s5424_s16 = smov 32   ;;  %vm2344_vm10 = vcmask 260096  }
  0x16   :  { %5141 = vmatpush1.bf16.msra.mxu0 %v5140_v6  ;;  %v5161_v28 = vpack.c.bf16 %v52_v27, %v51_v26  ;;  %v5164_v31 = vpack.c.bf16 %v54_v30, %v53_v29  ;;  %v55_v32 = vld [vmem:[%s6360_s2 + $0xa0] sm:$0xff]  ;;  %v56_v33 = vld [vmem:[%s6360_s2 + $0xa8] sm:$0xff]  ;;  %v57_v35 = vld [vmem:[%s6360_s2 + $0xb0] sm:$0xff]  ;;  %v5419_v27 = vmov 1966171168   ;;  %vm3222_vm11 = vcmask 260102  }
  0x17   :  { %5142 = vmatprep.subr.bf16.mxu0 %v5416_v3  ;;  %v5167_v34 = vpack.c.bf16 %v56_v33, %v55_v32  ;;  %v58_v36 = vld [vmem:[%s6360_s2 + $0xb8] sm:$0xff]  ;;  %v33_v38 = vld [vmem:[%s6359_s1] sm:$0xff]  ;;  %v291_v42 = vld [vmem:[%s6359_s1 + $0x10] sm:$0x3]  ;;  %vm3229_vm12 = vcmask 1046534   ;;  %s3220_s17 = sld [smem:[#allocation2]] }
  0x18   :  { %v5170_v37 = vpack.c.bf16 %v58_v36, %v57_v35  ;;  %v295_v44 = vrot.slane %v291_v42, %v5548_v41  ;;  %v302_v45 = vrot.slane %v291_v42, %v5554_v43  ;;  %v5561_v46 = vld [vmem:[%s6361_s3 + $0x80] sm:$0xff]  ;;  %v207_v12 = vld [vmem:[%s6360_s2 + $0xc8] sm:$0xff]  ;;  %v209_v15 = vld [vmem:[%s6360_s2 + $0xd8] sm:$0xff]  ;;  %s4785_s18 = sld [smem:[#allocation2 + $0x1]]  ;;  %vm3035_vm13 = vcmask 1040384   ;;  %s4803_s21 = sld [smem:[#allocation2 + $0x3]] }
  0x19   :  { %v62_v47 = vrot.slane %v5561_v46, %v5548_v41  ;;  %v206_v11 = vld [vmem:[%s6360_s2 + $0xc0] sm:$0xff]  ;;  %v309_v23 = vrot.slane %v5561_v46, %v5610_v21  ;;  %vm3798_vm14 = vcmask 57344   ;;  %vm3822_vm15 = vcmask 64512  }
  0x1a   :  { %5144 = vmatpush1.bf16.msra.mxu0 %v5143_v9  ;;  %297 = vbcast.lane.b32.xlu1 %v295_v44, 256  ;;  %v5173_v14 = vpack.c.bf16 %v207_v12, %v206_v11  ;;  %v5596_v17 = vld [vmem:[%s6361_s3] sm:$0xff] }
  0x1b   :  { %5145 = vmatprep.subr.bf16.mxu0 %v5416_v3  ;;  %v5601_v18 = vld [vmem:[%s6361_s3 + $0x20] sm:$0xff] }
  0x1c   :  { %5174 = vmatpush3.bf16.msra.mxu1 %v5173_v14  ;;  %v5606_v20 = vpack.c.bf16 %v5601_v18, %v5596_v17 }
  0x1d   :  { %5175 = vmatprep.subr.bf16.mxu1 %v5416_v3 }
  0x1e   :  { %5147 = vmatpush1.bf16.msra.mxu0 %v5146_v13  ;;  %304 = vbcast.lane.b32.xlu1 %v302_v45, 256  ;;  %v208_v13 = vld [vmem:[%s6360_s2 + $0xd0] sm:$0xff] }
  0x1f   :  { %5148 = vmatprep.subr.bf16.mxu0 %v5416_v3 }
  0x22   :  { %5150 = vmatpush1.bf16.msra.mxu0 %v5149_v16  ;;  %v5418_v16 = vmov 0.0  }
  0x23   :  { %5151 = vmatprep.subr.bf16.mxu0 %v5416_v3  ;;  %4921 = vmatprep.mubr.msk.f32.mxu1 %vm5417_vm4, %v5418_v16 }
  0x26   :  { %5153 = vmatpush1.bf16.msra.mxu0 %v5152_v19  ;;  %v5176_v19 = vpack.c.bf16 %v209_v15, %v208_v13 }
  0x27   :  { %5154 = vmatprep.subr.bf16.mxu0 %v5416_v3 }
  0x28   :  { %5177 = vmatpush3.bf16.msra.mxu1 %v5176_v19 }
  0x29   :  { %5179 = vmatprep.subr.bf16.mxu1 %v5606_v20 }
  0x2a   :  { %5156 = vmatpush1.bf16.msra.mxu0 %v5155_v22  ;;  %v5613_v22 = vsub.s32 5, %v5545_v40 }
  0x2b   :  { %5157 = vmatprep.subr.bf16.mxu0 %v5416_v3 }
  0x2c   :  { %v315_v26 = vrot.slane %v5561_v46, %v5613_v22 }
  0x2e   :  { %5159 = vmatpush1.bf16.msra.mxu0 %v5158_v25 }
  0x2f   :  { %5160 = vmatprep.subr.bf16.mxu0 %v5416_v3 }
  0x32   :  { %5162 = vmatpush1.bf16.msra.mxu0 %v5161_v28  ;;  %v324_v28 = vunpack.c.l.s4 %v5419_v27 }
  0x33   :  { %5163 = vmatprep.subr.bf16.mxu0 %v5416_v3 }
  0x36   :  { %5165 = vmatpush1.bf16.msra.mxu0 %v5164_v31  ;;  %v325_v31 = vunpack.c.0.s8 %v324_v28 }
  0x37   :  { %5166 = vmatprep.subr.bf16.mxu0 %v5416_v3 }
  0x3a   :  { %5168 = vmatpush1.bf16.msra.mxu0 %v5167_v34  ;;  %v5622_v34 = vsub.s32 %v325_v31, %v5545_v40 }
  0x3b   :  { %5169 = vmatprep.subr.bf16.mxu0 %v5416_v3 }
  0x3e   :  { %5171 = vmatpush1.bf16.msra.mxu0 %v5170_v37 }
  0x41   :  { %132 = vmatmul.mubr.f32.vlgmr.msra.gmra.mrb[0].mxu0 %v33_v38 }
  0x8c   :  { %v298_v24 = vpop.permute.xlu1 %297 }
  0x8d   :  { %v310_v25 = vmul.f32 %v309_v23, %v298_v24 }
  0x8f   :  { %v316_v29 = vadd.f32 %v315_v26, %v310_v25 }
  0x90   :  { %v305_v30 = vpop.permute.xlu1 %304 }
  0x91   :  { %v5619_v32 = vmax.f32 %v316_v29, 0.0  ;;  %v311_v33 = vmul.f32 %v309_v23, %v305_v30 }
  0x93   :  { %v322_v36 = vcombine.high %v5619_v32, %v5619_v32  ;;  %v317_v37 = vadd.f32 %v315_v26, %v311_v33  ;;  %v329_v39 = vrot.slane %v5619_v32, %v5622_v34  ;;  %v5651_v26 = vsub.s32 2, %v5545_v40 }
  0x95   :  { %v336_v44 = vrot.slane %v322_v36, %v5622_v34  ;;  %v5629_v45 = vmax.f32 %v317_v37, 0.0 }
 0x114   :  { %v133_v48 = vpop.f32.mrb[0].mxu0 }
 0x115   :  { %v134_v49 = vadd.f32 %v133_v48, %v62_v47  ;;  %v135_v50 = vpop.f32.mrb[1].mxu0 }
 0x116   :  { %v337_v50 = vcombine.high %v329_v39, %v329_v39 }
 0x117   :  { %v138_v51 = vcombine.high %v134_v49, %v134_v49  ;;  %v141_v52 = vsel %vm140_vm1, %v134_v49, 0.0 }
 0x118   :  { %v142_v53 = vrot.slane %v141_v52, 4 }
 0x119   :  { %v148_v54 = vsel %vm140_vm1, %v138_v51, 0.0  ;;  %v338_v51 = vcombine.high %v336_v44, %v336_v44 }
 0x11a   :  { %v143_v55 = vadd.f32 %v142_v53, %v141_v52  ;;  %v149_v56 = vrot.slane %v148_v54, 4  ;;  %v352_v52 = vrot.slane %v336_v44, %v5622_v34  ;;  %v377_v53 = vrot.slane %v5629_v45, %v5622_v34 }
 0x11c   :  { %v144_v57 = vrot.slane %v143_v55, 2  ;;  %v150_v58 = vadd.f32 %v149_v56, %v148_v54  ;;  %v345_v56 = vrot.slane %v329_v39, %v5622_v34 }
 0x11e   :  { %v145_v59 = vadd.f32 %v144_v57, %v143_v55  ;;  %v151_v60 = vrot.slane %v150_v58, 2  ;;  %v370_v55 = vcombine.high %v5629_v45, %v5629_v45  ;;  %v359_v57 = vrot.slane %v337_v50, %v5622_v34 }
 0x120   :  { %v146_v61 = vrot.slane %v145_v59, 1  ;;  %v152_v62 = vadd.f32 %v151_v60, %v150_v58  ;;  %v385_v58 = vcombine.high %v377_v53, %v377_v53  ;;  %v368_v60 = vcombine.high %v352_v52, %v352_v52 }
 0x122   :  { %v147_v63 = vadd.f32 %v146_v61, %v145_v59  ;;  %v153_v0 = vrot.slane %v152_v62, 1  ;;  %v366_v59 = vrot.slane %v338_v51, %v5622_v34  ;;  %v393_v61 = vrot.slane %v377_v53, %v5622_v34 }
 0x124   :  { %v154_v1 = vadd.f32 %v153_v0, %v152_v62  ;;  %v5565_v2 = vmul.f32 0.25, %v147_v63  ;;  %v384_v62 = vrot.slane %v370_v55, %v5622_v34  ;;  %v426_v63 = vcombine.low %v345_v56, %v359_v57 }
 0x125   :  { %v4754_v0 = vcombine.high %v345_v56, %v359_v57 }
 0x126   :  { %v5567_v4 = vmul.f32 0.25, %v154_v1  ;;  %v169_v6 = vmul.f32 %v5565_v2, %v5565_v2  ;;  %v407_v1 = vrot.slane %v385_v58, %v5622_v34  ;;  %v436_v12 = vrot.slane %v426_v63, %v5622_v34 }
 0x127   :  { %v443_v13 = vrot.slane %v4754_v0, %v5622_v34 }
 0x128   :  { %v161_v5 = vsel %vm160_vm2, %v5567_v4, %v5565_v2  ;;  %v170_v7 = vmul.f32 %v5567_v4, %v5567_v4  ;;  %v417_v11 = vcombine.high %v407_v1, %v407_v1 }
 0x129   :  { %v164_v8 = vsel %vm163_vm3, %v161_v5, 0.0  ;;  %v428_v5 = vcombine.low %v352_v52, %v366_v59  ;;  %v458_v30 = vcombine.low %v436_v12, %v443_v13 }
 0x12a   :  { %165 = vadd.xlane.f32.xlu0 %v164_v8  ;;  %v173_v9 = vsel %vm160_vm2, %v170_v7, %v169_v6  ;;  %v429_v6 = vcombine.low %v368_v60, %v393_v61  ;;  %v386_v7 = vcombine.high %v384_v62, %v384_v62  ;;  %v400_v8 = vrot.slane %v384_v62, %v5622_v34 }
 0x12b   :  { %v175_v10 = vsel %vm163_vm3, %v173_v9, 0.0  ;;  %v192_v9 = vrot.slane %v5561_v46, %v5554_v43  ;;  %v450_v15 = vrot.slane %v428_v5, %v5622_v34  ;;  %v466_v50 = vrot.slane %v458_v30, %v5622_v34 }
 0x12c   :  { %v457_v19 = vrot.slane %v429_v6, %v5622_v34  ;;  %v414_v24 = vrot.slane %v386_v7, %v5622_v34  ;;  %v416_v27 = vcombine.high %v400_v8, %v400_v8  ;;  %v476_v29 = vcombine.low %v417_v11, %v400_v8 }
 0x12e   :  { %176 = vadd.xlane.f32.xlu0 %v175_v10  ;;  %v415_v10 = vcombine.high %v393_v61, %v393_v61  ;;  %v459_v36 = vcombine.low %v450_v15, %v457_v19  ;;  %v477_v44 = vcombine.low %v414_v24, %v416_v27 }
 0x130   :  { %v475_v28 = vcombine.low %v407_v1, %v415_v10  ;;  %v473_v51 = vrot.slane %v459_v36, %v5622_v34  ;;  %v498_v53 = vrot.slane %v477_v44, %v5622_v34 }
 0x132   :  { %v474_v56 = vcombine.low %v466_v50, %v473_v51  ;;  %v513_v58 = vrot.slane %v498_v53, %v5622_v34 }
 0x1b7   :  { %v166_v35 = vpop.xlane.xlu0 %165 }
 0x1b8   :  { %v168_v38 = vmul.f32 0.03125, %v166_v35 }
 0x1ba   :  { %v179_v47 = vmul.f32 %v168_v38, %v168_v38  ;;  %v182_v14 = vrot.slane %v168_v38, 1  ;;  %v185_v31 = vsub.f32 %v5565_v2, %v168_v38  ;;  %v5664_v2 = vld [vmem:[%s6361_s3 + $0x40] sm:$0xff] }
 0x1bb   :  { %v177_v42 = vpop.xlane.xlu0 %176 }
 0x1bc   :  { %v178_v48 = vmul.f32 0.03125, %v177_v42  ;;  %v186_v33 = vsub.f32 %v5567_v4, %v182_v14  ;;  %v203_v42 = vrot.slane %v5561_v46, %v5651_v26  ;;  %v5669_v4 = vld [vmem:[%s6361_s3 + $0x60] sm:$0xff] }
 0x1bd   :  { %v5182_v52 = vpack.c.bf16 %v5669_v4, %v5664_v2 }
 0x1be   :  { %v180_v49 = vsub.f32 %v178_v48, %v179_v47  ;;  %v484_v47 = vrot.slane %v475_v28, %v5622_v34  ;;  %v491_v48 = vrot.slane %v476_v29, %v5622_v34 }
 0x1c0   :  { %v187_v54 = vadd.f32 1e-05, %v180_v49 }
 0x1c2   :  { %5353 = vrsqrt.f32 %v187_v54  ;;  %v499_v54 = vcombine.low %v484_v47, %v491_v48 }
 0x1c4   :  { %v506_v57 = vrot.slane %v499_v54, %v5622_v34 }
 0x1c6   :  { %v514_v59 = vcombine.low %v506_v57, %v513_v58 }
 0x1cc   :  { %v5354_v23 = vpop.eup %5353 }
 0x1cd   :  { %v193_v25 = vmul.f32 %v5354_v23, %v192_v9 }
 0x1cf   :  { %v195_v35 = vrot.slane %v193_v25, 1  ;;  %v198_v37 = vmul.f32 %v193_v25, %v185_v31 }
 0x1d1   :  { %v199_v39 = vmul.f32 %v195_v35, %v186_v33  ;;  %v204_v46 = vadd.f32 %v203_v42, %v198_v37 }
 0x1d3   :  { %v205_v49 = vadd.f32 %v203_v42, %v199_v39 }
 0x1d5   :  { %v216_v38 = vrot.slane %v205_v49, 7 }
 0x1d7   :  { %v217_v55 = vsel %vm160_vm2, %v216_v38, %v204_v46 }
 0x1d8   :  { %4922 = vmatmul.mubr.msk.f32.vlgmr.msra.gmra.mrb[0].mxu1 %vm218_vm5, %v217_v55 }
 0x1d9   :  { %5181 = vmatpush3.bf16.msra.mxu1 %v5606_v20  ;;  %4932 = vmatprep.mubr.msk.f32.mxu1 %vm218_vm5, %v474_v56  ;;  %v5689_v20 = vld [vmem:[%s6361_s3 + $0xa0] sm:$0xff] }
 0x1da   :  { %5183 = vmatprep.subr.bf16.mxu1 %v5182_v52  ;;  %v425_v62 = vrot.slane %v5689_v20, %v5548_v41 }
 0x1dd   :  { %5185 = vmatpush3.bf16.msra.mxu1 %v5182_v52 }
 0x1de   :  { %4935 = vmatprep.subr.mxu1 %v5418_v16 }
 0x1e0   :  { %4933 = vmatmul.mubr.msk.f32.vlgmr.msra.gmra.mrb[2].mxu1 %vm218_vm5, %v514_v59 }
 0x1e1   :  { %4937 = vmatprep.mubr.msk.f32.mxu1 %vm5417_vm4, %v5418_v16 }
 0x2ab   :  { %v5684_v60 = vpop.f32.mrb[0].mxu1 }
 0x2ac   :  { %v4923_v61 = vpop.f32.mrb[1].mxu1 }
 0x2b3   :  { %v4934_v63 = vpop.f32.mrb[2].mxu1 }
 0x2b4   :  { %v591_v0 = vadd.f32 %v4934_v63, %v425_v62  ;;  %v585_v1 = vpop.f32.mrb[3].mxu1 }
 0x2b5   :  { %v586_v5 = vadd.f32 %v585_v1, %v425_v62 }
 0x2b6   :  { %v645_v6 = vcombine.high %v591_v0, %v591_v0  ;;  %v652_v7 = vrot.slane %v591_v0, %v5622_v34 }
 0x2b7   :  { %v596_v8 = vcombine.high %v586_v5, %v586_v5  ;;  %v603_v9 = vrot.slane %v586_v5, %v5622_v34 }
 0x2b8   :  { %v659_v10 = vrot.slane %v645_v6, %v5622_v34  ;;  %v660_v11 = vcombine.high %v652_v7, %v652_v7  ;;  %v668_v12 = vrot.slane %v652_v7, %v5622_v34 }
 0x2b9   :  { %v610_v13 = vrot.slane %v596_v8, %v5622_v34  ;;  %v611_v14 = vcombine.high %v603_v9, %v603_v9  ;;  %v5699_v15 = vrot.slane %v603_v9, %v5622_v34 }
 0x2ba   :  { %v5702_v19 = vrot.slane %v659_v10, %v5622_v34  ;;  %v682_v23 = vrot.slane %v660_v11, %v5622_v34  ;;  %726 = vrot.lane.b32.xlu1 %v668_v12, %s5420_s12  ;;  %v690_v24 = vcombine.high %v668_v12, %v668_v12  ;;  %v760_v33 = vmul.f32 0.25, %v668_v12 }
 0x2bb   :  { %v612_v25 = vcombine.high %v610_v13, %v610_v13  ;;  %v5707_v27 = vrot.slane %v610_v13, %v5622_v34  ;;  %v5710_v28 = vrot.slane %v611_v14, %v5622_v34  ;;  %710 = vrot.lane.b32.xlu0 %v5699_v15, %s5420_s12  ;;  %v752_v29 = vmul.f32 0.25, %v5699_v15 }
 0x2bc   :  { %v761_v30 = vmul.f32 0.25, %v682_v23  ;;  %v762_v31 = vmul.f32 0.25, %v690_v24  ;;  %v764_v35 = vmul.f32 0.25, %v5702_v19  ;;  %v691_v37 = vcombine.high %v682_v23, %v682_v23 }
 0x2bd   :  { %v5717_v36 = vrot.slane %v612_v25, %v5622_v34  ;;  %v641_v39 = vcombine.high %v5699_v15, %v5699_v15  ;;  %v661_v44 = vcombine.high %v659_v10, %v659_v10  ;;  %v643_v47 = vcombine.high %v5710_v28, %v5710_v28 }
 0x2be   :  { %730 = vrot.lane.b32.xlu1 %v690_v24, %s5420_s12  ;;  %v968_v42 = vcombine.low %v761_v30, %v762_v31  ;;  %v753_v48 = vmul.f32 0.25, %v5710_v28  ;;  %v756_v49 = vmul.f32 0.25, %v5707_v27  ;;  %v1016_v50 = vcombine.low %v682_v23, %v690_v24 }
 0x2bf   :  { %728 = vrot.lane.b32.xlu0 %v682_v23, %s5420_s12  ;;  %v763_v51 = vmul.f32 0.25, %v691_v37  ;;  %v1017_v46 = vcombine.low %v691_v37, %v5702_v19  ;;  %v757_v38 = vmul.f32 0.25, %v5717_v36  ;;  %v644_v52 = vcombine.high %v5717_v36, %v5717_v36 }
 0x2c0   :  { %v689_v53 = vrot.slane %v661_v44, %v5622_v34  ;;  %v755_v54 = vmul.f32 0.25, %v643_v47  ;;  %v754_v56 = vmul.f32 0.25, %v641_v39  ;;  %v787_v57 = vcombine.low %v752_v29, %v753_v48 }
 0x2c1   :  { %v969_v55 = vcombine.low %v763_v51, %v764_v35  ;;  %v1038_v58 = vrot.slane %v1017_v46, %v5622_v34  ;;  %v759_v59 = vmul.f32 0.25, %v644_v52  ;;  %v1015_v61 = vcombine.low %v644_v52, %v668_v12 }
 0x2c2   :  { %712 = vrot.lane.b32.xlu1 %v5710_v28, %s5420_s12  ;;  %v765_v62 = vmul.f32 0.25, %v689_v53  ;;  %v1045_v63 = vrot.slane %v689_v53, %v5622_v34  ;;  %v788_v1 = vcombine.low %v754_v56, %v755_v54  ;;  %v1031_v5 = vrot.slane %v1016_v50, %v5622_v34 }
 0x2c3   :  { %v990_v0 = vrot.slane %v969_v55, %v5622_v34  ;;  %732 = vrot.lane.b32.xlu0 %v691_v37, %s5420_s12  ;;  %v642_v6 = vcombine.high %v5707_v27, %v5707_v27  ;;  %v967_v7 = vcombine.low %v759_v59, %v760_v33  ;;  %v1024_v9 = vrot.slane %v1015_v61, %v5622_v34 }
 0x2c4   :  { %v997_v8 = vrot.slane %v765_v62, %v5622_v34  ;;  %v1047_v10 = vcombine.low %v1038_v58, %v1045_v63  ;;  %v796_v11 = vrot.slane %v787_v57, %v5622_v34  ;;  %v803_v12 = vrot.slane %v788_v1, %v5622_v34 }
 0x2c5   :  { %v758_v13 = vmul.f32 0.25, %v642_v6  ;;  %v789_v14 = vcombine.low %v756_v49, %v757_v38  ;;  %v983_v23 = vrot.slane %v968_v42, %v5622_v34  ;;  %v976_v24 = vrot.slane %v967_v7, %v5622_v34 }
 0x2c6   :  { %714 = vrot.lane.b32.xlu1 %v641_v39, %s5420_s12  ;;  %v999_v25 = vcombine.low %v990_v0, %v997_v8  ;;  %v1046_v29 = vcombine.low %v1024_v9, %v1031_v5  ;;  %v818_v30 = vcombine.low %v796_v11, %v803_v12  ;;  %v1061_v44 = vrot.slane %v1047_v10, %v5622_v34 }
 0x2c7   :  { %724 = vrot.lane.b32.xlu0 %v644_v52, %s5420_s12  ;;  %v817_v31 = vrot.slane %v758_v13, %v5622_v34  ;;  %v810_v33 = vrot.slane %v789_v14, %v5622_v34  ;;  %v998_v35 = vcombine.low %v976_v24, %v983_v23  ;;  %v837_v46 = vcombine.low %v5707_v27, %v5717_v36 }
 0x2c8   :  { %v1054_v37 = vrot.slane %v1046_v29, %v5622_v34  ;;  %v826_v42 = vrot.slane %v818_v30, %v5622_v34  ;;  %v1013_v50 = vrot.slane %v999_v25, %v5622_v34  ;;  %v835_v54 = vcombine.low %v5699_v15, %v5710_v28 }
 0x2c9   :  { %v819_v48 = vcombine.low %v810_v33, %v817_v31  ;;  %v1006_v49 = vrot.slane %v998_v35, %v5622_v34  ;;  %v4757_v55 = vcombine.high %v5699_v15, %v5710_v28 }
 0x2ca   :  { %718 = vrot.lane.b32.xlu1 %v5707_v27, %s5420_s12  ;;  %v5756_v39 = vcombine.low %v1054_v37, %v1061_v44  ;;  %v865_v27 = vrot.slane %v642_v6, %v5622_v34  ;;  %v844_v56 = vrot.slane %v835_v54, %v5622_v34 }
 0x2cb   :  { %736 = vrot.lane.b32.xlu0 %v689_v53, %s5420_s12  ;;  %v833_v51 = vrot.slane %v819_v48, %v5622_v34  ;;  %v5764_v38 = vcombine.low %v1006_v49, %v1013_v50  ;;  %v858_v53 = vrot.slane %v837_v46, %v5622_v34 }
 0x2cd   :  { %v5766_v52 = vcombine.low %v826_v42, %v833_v51  ;;  %v867_v57 = vcombine.low %v858_v53, %v865_v27 }
 0x2ce   :  { %716 = vrot.lane.b32.xlu1 %v643_v47, %s5420_s12  ;;  %v851_v47 = vrot.slane %v4757_v55, %v5622_v34 }
 0x2cf   :  { %1063 = vrot.lane.b32.xlu0 %v5756_v39, %s5421_s13  ;;  %v881_v15 = vrot.slane %v867_v57, %v5622_v34 }
 0x2d0   :  { %v866_v58 = vcombine.low %v844_v56, %v851_v47 }
 0x2d2   :  { %720 = vrot.lane.b32.xlu1 %v5717_v36, %s5420_s12  ;;  %v874_v28 = vrot.slane %v866_v58, %v5622_v34 }
 0x2d4   :  { %v5786_v59 = vcombine.low %v874_v28, %v881_v15 }
 0x2d6   :  { %722 = vrot.lane.b32.xlu1 %v642_v6, %s5420_s12 }
 0x2da   :  { %734 = vrot.lane.b32.xlu1 %v5702_v19, %s5420_s12 }
 0x2de   :  { %883 = vrot.lane.b32.xlu1 %v5786_v59, %s5421_s13 }
 0x32c   :  { %v727_v36 = vpop.permute.xlu1 %726 }
 0x32d   :  { %v711_v61 = vpop.permute.xlu0 %710  ;;  %v774_v12 = vmul.f32 0.25, %v727_v36 }
 0x32e   :  { %v766_v7 = vmul.f32 0.25, %v711_v61 }
 0x330   :  { %v731_v62 = vpop.permute.xlu1 %730 }
 0x331   :  { %v776_v63 = vmul.f32 0.25, %v731_v62  ;;  %v729_v0 = vpop.permute.xlu0 %728 }
 0x332   :  { %v775_v1 = vmul.f32 0.25, %v729_v0  ;;  %v1374_v47 = vcombine.low %v729_v0, %v731_v62 }
 0x334   :  { %v1326_v5 = vcombine.low %v775_v1, %v776_v63  ;;  %v713_v6 = vpop.permute.xlu1 %712 }
 0x335   :  { %v767_v8 = vmul.f32 0.25, %v713_v6  ;;  %v733_v9 = vpop.permute.xlu0 %732  ;;  %v1194_v37 = vcombine.low %v711_v61, %v713_v6 }
 0x336   :  { %v1341_v24 = vrot.slane %v1326_v5, %v5622_v34 }
 0x337   :  { %v1146_v10 = vcombine.low %v766_v7, %v767_v8  ;;  %v1203_v55 = vrot.slane %v1194_v37, %v5622_v34  ;;  %v777_v8 = vmul.f32 0.25, %v733_v9 }
 0x338   :  { %v715_v19 = vpop.permute.xlu1 %714 }
 0x339   :  { %v725_v11 = vpop.permute.xlu0 %724  ;;  %v768_v31 = vmul.f32 0.25, %v715_v19  ;;  %v1155_v48 = vrot.slane %v1146_v10, %v5622_v34 }
 0x33a   :  { %v773_v13 = vmul.f32 0.25, %v725_v11  ;;  %v1373_v53 = vcombine.low %v725_v11, %v727_v36  ;;  %v1389_v36 = vrot.slane %v1374_v47, %v5622_v34 }
 0x33c   :  { %v1325_v14 = vcombine.low %v773_v13, %v774_v12  ;;  %v719_v23 = vpop.permute.xlu1 %718  ;;  %v1382_v1 = vrot.slane %v1373_v53, %v5622_v34 }
 0x33d   :  { %v770_v50 = vmul.f32 0.25, %v719_v23  ;;  %v737_v15 = vpop.permute.xlu0 %736 }
 0x33e   :  { %v1334_v25 = vrot.slane %v1325_v14, %v5622_v34  ;;  %v779_v10 = vmul.f32 0.25, %v737_v15  ;;  %v1404_v14 = vcombine.low %v1382_v1, %v1389_v36 }
 0x340   :  { %v1356_v29 = vcombine.low %v1334_v25, %v1341_v24  ;;  %v717_v30 = vpop.permute.xlu1 %716 }
 0x341   :  { %v769_v33 = vmul.f32 0.25, %v717_v30  ;;  %v1195_v35 = vcombine.low %v715_v19, %v717_v30 }
 0x343   :  { %v1147_v44 = vcombine.low %v768_v31, %v769_v33  ;;  %v1210_v42 = vrot.slane %v1195_v35, %v5622_v34  ;;  %v1355_v35 = vrot.slane %v779_v10, %v5622_v34 }
 0x344   :  { %v721_v49 = vpop.permute.xlu1 %720 }
 0x345   :  { %v1162_v51 = vrot.slane %v1147_v44, %v5622_v34  ;;  %v771_v46 = vmul.f32 0.25, %v721_v49  ;;  %v1196_v54 = vcombine.low %v719_v23, %v721_v49  ;;  %v1225_v57 = vcombine.low %v1203_v55, %v1210_v42 }
 0x346   :  { %v1403_v23 = vrot.slane %v737_v15, %v5622_v34  ;;  %v1412_v49 = vrot.slane %v1404_v14, %v5622_v34 }
 0x347   :  { %v1177_v27 = vcombine.low %v1155_v48, %v1162_v51  ;;  %v1148_v56 = vcombine.low %v770_v50, %v771_v46  ;;  %v1217_v28 = vrot.slane %v1196_v54, %v5622_v34  ;;  %v1233_v0 = vrot.slane %v1225_v57, %v5622_v34  ;;  %v1064_v51 = vpop.permute.xlu0 %1063 }
 0x348   :  { %v723_v58 = vpop.permute.xlu1 %722  ;;  %v1364_v46 = vrot.slane %v1356_v29, %v5622_v34 }
 0x349   :  { %v772_v61 = vmul.f32 0.25, %v723_v58  ;;  %v1224_v63 = vrot.slane %v723_v58, %v5622_v34  ;;  %v1169_v5 = vrot.slane %v1148_v56, %v5622_v34  ;;  %v1185_v24 = vrot.slane %v1177_v27, %v5622_v34 }
 0x34b   :  { %v1176_v6 = vrot.slane %v772_v61, %v5622_v34  ;;  %v1226_v7 = vcombine.low %v1217_v28, %v1224_v63 }
 0x34c   :  { %v735_v62 = vpop.permute.xlu1 %734 }
 0x34d   :  { %v1178_v19 = vcombine.low %v1169_v5, %v1176_v6  ;;  %v1240_v11 = vrot.slane %v1226_v7, %v5622_v34  ;;  %v778_v12 = vmul.f32 0.25, %v735_v62  ;;  %v1375_v13 = vcombine.low %v733_v9, %v735_v62 }
 0x34f   :  { %v1192_v25 = vrot.slane %v1178_v19, %v5622_v34  ;;  %v1327_v30 = vcombine.low %v777_v8, %v778_v12  ;;  %v1396_v31 = vrot.slane %v1375_v13, %v5622_v34  ;;  %v5808_v33 = vcombine.low %v1233_v0, %v1240_v11 }
 0x350   :  { %v884_v37 = vpop.permute.xlu1 %883 }
 0x351   :  { %v1193_v44 = vcombine.low %v1185_v24, %v1192_v25  ;;  %v1348_v48 = vrot.slane %v1327_v30, %v5622_v34  ;;  %v1405_v9 = vcombine.low %v1396_v31, %v1403_v23  ;;  %1242 = vrot.lane.b32.xlu1 %v5808_v33, %s5421_s13  ;;  %4936 = vmatpush3.xpose.msk.msra.mxu1 %vm885_vm6, %v884_v37 }
 0x352   :  { %4940 = vmatprep.subr.mxu1 %v5418_v16 }
 0x353   :  { %v1357_v42 = vcombine.low %v1348_v48, %v1355_v35  ;;  %v1419_v50 = vrot.slane %v1405_v9, %v5622_v34 }
 0x354   :  { %4938 = vmatmul.mubr.msk.f32.vlgmr.msra.gmra.mrb[4].mxu1 %vm885_vm6, %v5766_v52 }
 0x355   :  { %v1371_v54 = vrot.slane %v1357_v42, %v5622_v34  ;;  %1605 = vrot.lane.b32.xlu1 %v5756_v39, %s5422_s14  ;;  %4941 = vmatpush3.xpose.msk.msra.mxu1 %vm885_vm6, %v1064_v51  ;;  %v1420_v55 = vcombine.low %v1412_v49, %v1419_v50 }
 0x356   :  { %4942 = vmatprep.mubr.msk.f32.mxu1 %vm5417_vm4, %v5418_v16  ;;  %4945 = vmatprep.subr.mxu1 %v5418_v16 }
 0x357   :  { %v1372_v53 = vcombine.low %v1364_v46, %v1371_v54  ;;  %1421 = vrot.lane.b32.xlu0 %v1420_v55, %s5421_s13  ;;  %v5271_v54 = vpack.i.bf16 %v5601_v18, %v5596_v17 }
 0x358   :  { %4943 = vmatmul.mubr.msk.f32.vlgmr.msra.gmra.mrb[6].mxu1 %vm885_vm6, %v5764_v38 }
 0x359   :  { %4947 = vmatprep.mubr.msk.f32.mxu1 %vm5417_vm4, %v5418_v16 }
 0x35b   :  { %1526 = vrot.lane.b32.xlu0 %v5786_v59, %s5422_s14 }
 0x3c3   :  { %v1243_v39 = vpop.permute.xlu1 %1242 }
 0x3c4   :  { %4946 = vmatpush3.xpose.msk.msra.mxu1 %vm885_vm6, %v1243_v39  ;;  %v5276_v39 = vpack.i.bf16 %v5669_v4, %v5664_v2 }
 0x3c5   :  { %4950 = vmatprep.subr.mxu1 %v5418_v16 }
 0x3c7   :  { %4948 = vmatmul.mubr.msk.f32.vlgmr.msra.gmra.mrb[8].mxu1 %vm885_vm6, %v1193_v44  ;;  %v1606_v19 = vpop.permute.xlu1 %1605 }
 0x3c8   :  { %4952 = vmatprep.mubr.msk.f32.mxu1 %vm5417_vm4, %v5418_v16 }
 0x3c9   :  { %v1422_v52 = vpop.permute.xlu0 %1421 }
 0x3ca   :  { %4951 = vmatpush3.xpose.msk.msra.mxu1 %vm885_vm6, %v1422_v52 }
 0x3cb   :  { %4955 = vmatprep.subr.mxu1 %v5418_v16 }
 0x3cd   :  { %v1527_v38 = vpop.permute.xlu0 %1526  ;;  %4953 = vmatmul.mubr.msk.f32.vlgmr.msra.gmra.mrb[10].mxu1 %vm885_vm6, %v1372_v53 }
 0x3ce   :  { %4956 = vmatpush3.msk.msra.mxu1 %vm1532_vm7, %v1527_v38  ;;  %4957 = vmatprep.mubr.msk.f32.mxu1 %vm5417_vm4, %v5418_v16 }
 0x3cf   :  { %4960 = vmatprep.subr.mxu1 %v5418_v16 }
 0x427   :  { %v956_v59 = vpop.f32.mrb[4].mxu1 }
 0x428   :  { %v1497_v29 = vmul.f32 1.442695, %v956_v59  ;;  %v4939_v27 = vpop.f32.mrb[5].mxu1 }
 0x42a   :  { %5355 = vpow2.f32 %v1497_v29 }
 0x42b   :  { %v1135_v56 = vpop.f32.mrb[6].mxu1 }
 0x42c   :  { %v1499_v47 = vmul.f32 1.442695, %v1135_v56  ;;  %v4944_v57 = vpop.f32.mrb[7].mxu1 }
 0x42e   :  { %5357 = vpow2.f32 %v1499_v47 }
 0x434   :  { %v5356_v58 = vpop.eup %5355 }
 0x435   :  { %v1506_v15 = vsel %vm1505_vm8, %v5356_v58, 0.0 }
 0x436   :  { %1507 = vadd.xlane.f32.xlu1 %v1506_v15 }
 0x438   :  { %v5358_v28 = vpop.eup %5357 }
 0x439   :  { %v1509_v61 = vsel %vm1505_vm8, %v5358_v28, 0.0 }
 0x43a   :  { %1510 = vadd.xlane.f32.xlu0 %v1509_v61 }
 0x49a   :  { %v1314_v63 = vpop.f32.mrb[8].mxu1 }
 0x49b   :  { %v1501_v1 = vmul.f32 1.442695, %v1314_v63  ;;  %v4949_v5 = vpop.f32.mrb[9].mxu1 }
 0x49d   :  { %5359 = vpow2.f32 %v1501_v1 }
 0x4a0   :  { %v1493_v6 = vpop.f32.mrb[10].mxu1 }
 0x4a1   :  { %v1503_v7 = vmul.f32 1.442695, %v1493_v6  ;;  %v4954_v36 = vpop.f32.mrb[11].mxu1 }
 0x4a3   :  { %5361 = vpow2.f32 %v1503_v7 }
 0x4a7   :  { %v5360_v8 = vpop.eup %5359 }
 0x4a8   :  { %v1512_v10 = vsel %vm1505_vm8, %v5360_v8, 0.0 }
 0x4a9   :  { %1513 = vadd.xlane.f32.xlu0 %v1512_v10 }
 0x4ad   :  { %v5362_v62 = vpop.eup %5361 }
 0x4ae   :  { %v1515_v0 = vsel %vm1505_vm8, %v5362_v62, 0.0 }
 0x4af   :  { %1516 = vadd.xlane.f32.xlu1 %v1515_v0 }
 0x4bf   :  { %1759 = vrot.lane.b32.xlu0 %v1420_v55, %s5422_s14 }
 0x4c0   :  { %1682 = vrot.lane.b32.xlu1 %v5808_v33, %s5422_s14 }
 0x4c3   :  { %v1508_v11 = vpop.xlane.xlu1 %1507 }
 0x4c4   :  { %5363 = vrcp.f32 %v1508_v11 }
 0x4c7   :  { %v1511_v12 = vpop.xlane.xlu0 %1510 }
 0x4c8   :  { %5365 = vrcp.f32 %v1511_v12 }
 0x4ce   :  { %v5364_v13 = vpop.eup %5363 }
 0x4cf   :  { %v1522_v14 = vmul.f32 %v5364_v13, %v5356_v58 }
 0x4d1   :  { %4958 = vmatmul.mubr.msk.f32.vlgmr.msra.gmra.mrb[12].mxu1 %vm1528_vm9, %v1522_v14 }
 0x4d2   :  { %v5366_v23 = vpop.eup %5365  ;;  %4961 = vmatpush3.msk.msra.mxu1 %vm1532_vm7, %v1606_v19  ;;  %4962 = vmatprep.mubr.msk.f32.mxu1 %vm5417_vm4, %v5418_v16 }
 0x4d3   :  { %v1523_v24 = vmul.f32 %v5366_v23, %v5358_v28  ;;  %4965 = vmatprep.subr.mxu1 %v5418_v16 }
 0x4d5   :  { %4963 = vmatmul.mubr.msk.f32.vlgmr.msra.gmra.mrb[14].mxu1 %vm1528_vm9, %v1523_v24 }
 0x4d6   :  { %4967 = vmatprep.mubr.msk.f32.mxu1 %vm5417_vm4, %v5418_v16 }
 0x536   :  { %v1514_v25 = vpop.xlane.xlu0 %1513 }
 0x537   :  { %5367 = vrcp.f32 %v1514_v25 }
 0x53a   :  { %v1760_v37 = vpop.permute.xlu0 %1759 }
 0x53c   :  { %v1517_v30 = vpop.xlane.xlu1 %1516 }
 0x53d   :  { %5369 = vrcp.f32 %v1517_v30 }
 0x540   :  { %v1683_v31 = vpop.permute.xlu1 %1682 }
 0x541   :  { %v5368_v33 = vpop.eup %5367  ;;  %4966 = vmatpush3.msk.msra.mxu1 %vm1532_vm7, %v1683_v31 }
 0x542   :  { %v1524_v35 = vmul.f32 %v5368_v33, %v5360_v8  ;;  %4970 = vmatprep.subr.mxu1 %v5418_v16 }
 0x544   :  { %4968 = vmatmul.mubr.msk.f32.vlgmr.msra.gmra.mrb[16].mxu1 %vm1528_vm9, %v1524_v35 }
 0x545   :  { %4971 = vmatpush3.msk.msra.mxu1 %vm1532_vm7, %v1760_v37  ;;  %4972 = vmatprep.mubr.msk.f32.mxu1 %vm5417_vm4, %v5418_v16 }
 0x547   :  { %v5370_v44 = vpop.eup %5369 }
 0x548   :  { %v1525_v48 = vmul.f32 %v5370_v44, %v5362_v62 }
 0x54a   :  { %4973 = vmatmul.mubr.msk.f32.vlgmr.msra.gmra.mrb[18].mxu1 %vm1528_vm9, %v1525_v48 }
 0x5a4   :  { %v1601_v9 = vpop.f32.mrb[12].mxu1 }
 0x5a5   :  { %v4959_v42 = vpop.f32.mrb[13].mxu1 }
 0x5a8   :  { %v1678_v49 = vpop.f32.mrb[14].mxu1 }
 0x5a9   :  { %v4964_v50 = vpop.f32.mrb[15].mxu1 }
 0x617   :  { %v1755_v51 = vpop.f32.mrb[16].mxu1 }
 0x618   :  { %1838 = vrot.lane.b32.xlu1 %v1755_v51, %s5423_s15  ;;  %v4969_v46 = vpop.f32.mrb[17].mxu1 }
 0x61c   :  { %5272 = vrot.lane.b32.xlu1 %v5271_v54, %s5424_s16 }
 0x61d   :  { %v1832_v55 = vpop.f32.mrb[18].mxu1 }
 0x61e   :  { %1840 = vrot.lane.b32.xlu0 %v1832_v55, %s5423_s15  ;;  %v4974_v53 = vpop.f32.mrb[19].mxu1 }
 0x622   :  { %5277 = vrot.lane.b32.xlu0 %v5276_v39, %s5424_s16 }
 0x68a   :  { %v1839_v52 = vpop.permute.xlu1 %1838 }
 0x68b   :  { %v1844_v38 = vsel %vm885_vm6, %v1601_v9, %v1839_v52 }
 0x68c   :  { %v1848_v59 = vcombine.high %v1844_v38, %v1844_v38  ;;  %v1855_v29 = vrot.slane %v1844_v38, %v5622_v34 }
 0x68e   :  { %v1862_v17 = vrot.slane %v1848_v59, %v5622_v34  ;;  %v1863_v18 = vcombine.high %v1855_v29, %v1855_v29  ;;  %v5273_v27 = vpop.permute.xlu1 %5272  ;;  %v1871_v58 = vrot.slane %v1855_v29, %v5622_v34 }
 0x68f   :  { %v5275_v56 = vunpack.i.h.bf16 %v5273_v27  ;;  %v5274_v47 = vunpack.i.l.bf16 %v5273_v27  ;;  %v5425_v27 = vmov 7  }
 0x690   :  { %v1864_v57 = vcombine.high %v1862_v17, %v1862_v17  ;;  %v1878_v15 = vrot.slane %v1862_v17, %v5622_v34  ;;  %v1885_v2 = vrot.slane %v1863_v18, %v5622_v34  ;;  %v1841_v4 = vpop.permute.xlu0 %1840  ;;  %5287 = vset.pattern.permute.xlu1 %v5425_v27  ;;  %5286 = vset.pattern.permute.xlu0 %v5425_v27 }
 0x691   :  { %v1845_v28 = vsel %vm885_vm6, %v1678_v49, %v1841_v4  ;;  %v5186_v61 = vpack.c.bf16 %v5275_v56, %v5274_v47  ;;  %v1947_v56 = vrot.slane %v5689_v20, %v5554_v43 }
 0x692   :  { %v1892_v63 = vrot.slane %v1864_v57, %v5622_v34  ;;  %v1948_v1 = vcombine.low %v1871_v58, %v1885_v2  ;;  %v4774_v5 = vcombine.high %v1871_v58, %v1885_v2  ;;  %v1896_v6 = vcombine.high %v1845_v28, %v1845_v28 }
 0x693   :  { %v1903_v7 = vrot.slane %v1845_v28, %v5622_v34  ;;  %5187 = vmatprep.subr.bf16.mxu0 %v5186_v61  ;;  %v1894_v36 = vcombine.high %v1878_v15, %v1878_v15 }
 0x694   :  { %v5278_v8 = vpop.permute.xlu0 %5277  ;;  %5189 = vmatpush3.bf16.msra.mxu0 %v5186_v61  ;;  %v1910_v10 = vrot.slane %v1896_v6, %v5622_v34  ;;  %v1950_v11 = vcombine.low %v1878_v15, %v1892_v63  ;;  %v1958_v12 = vrot.slane %v1948_v1, %v5622_v34  ;;  %v1965_v13 = vrot.slane %v4774_v5, %v5622_v34 }
 0x695   :  { %v1911_v62 = vcombine.high %v1903_v7, %v1903_v7  ;;  %v1919_v0 = vrot.slane %v1903_v7, %v5622_v34  ;;  %v5280_v19 = vunpack.i.h.bf16 %v5278_v8  ;;  %v5279_v14 = vunpack.i.l.bf16 %v5278_v8 }
 0x696   :  { %v1912_v23 = vcombine.high %v1910_v10, %v1910_v10  ;;  %v1926_v24 = vrot.slane %v1910_v10, %v5622_v34  ;;  %v1972_v9 = vrot.slane %v1950_v11, %v5622_v34  ;;  %v1980_v42 = vcombine.low %v1958_v12, %v1965_v13 }
 0x697   :  { %v1933_v25 = vrot.slane %v1911_v62, %v5622_v34  ;;  %v1941_v30 = vcombine.high %v1919_v0, %v1919_v0  ;;  %v1951_v31 = vcombine.low %v1894_v36, %v1919_v0  ;;  %v5190_v33 = vpack.c.bf16 %v5280_v19, %v5279_v14 }
 0x698   :  { %v1940_v35 = vrot.slane %v1912_v23, %v5622_v34  ;;  %v1942_v37 = vcombine.high %v1926_v24, %v1926_v24  ;;  %v1988_v39 = vrot.slane %v1980_v42, %v5622_v34 }
 0x699   :  { %v1943_v44 = vcombine.high %v1933_v25, %v1933_v25  ;;  %v1997_v48 = vcombine.low %v1933_v25, %v1941_v30  ;;  %v1979_v49 = vrot.slane %v1951_v31, %v5622_v34  ;;  %5191 = vmatprep.subr.bf16.mxu0 %v5190_v33 }
 0x69a   :  { %v1999_v51 = vcombine.low %v1940_v35, %v1942_v37  ;;  %5193 = vmatpush3.bf16.msra.mxu0 %v5190_v33 }
 0x69b   :  { %v1998_v50 = vcombine.low %v1943_v44, %v1926_v24  ;;  %v1981_v46 = vcombine.low %v1972_v9, %v1979_v49  ;;  %v2006_v54 = vrot.slane %v1997_v48, %v5622_v34 }
 0x69c   :  { %v2020_v53 = vrot.slane %v1999_v51, %v5622_v34 }
 0x69d   :  { %v2013_v55 = vrot.slane %v1998_v50, %v5622_v34  ;;  %v1995_v52 = vrot.slane %v1981_v46, %v5622_v34 }
 0x69e   :  { %v2035_v17 = vrot.slane %v2020_v53, %v5622_v34 }
 0x69f   :  { %v2021_v38 = vcombine.low %v2006_v54, %v2013_v55  ;;  %v1996_v59 = vcombine.low %v1988_v39, %v1995_v52 }
 0x6a1   :  { %v2028_v29 = vrot.slane %v2021_v38, %v5622_v34  ;;  %4983 = vmatprep.mubr.msk.f32.mxu0 %vm218_vm5, %v1996_v59 }
 0x6a3   :  { %v2036_v18 = vcombine.low %v2028_v29, %v2035_v17 }
 0x6a5   :  { %4984 = vmatmul.mubr.msk.f32.vlgmr.msra.gmra.mrb[2].mxu0 %vm218_vm5, %v2036_v18 }
 0x778   :  { %v4985_v47 = vpop.f32.mrb[2].mxu0 }
 0x779   :  { %v2129_v57 = vadd.f32 %v4985_v47, %v1947_v56  ;;  %v2123_v58 = vpop.f32.mrb[3].mxu0 }
 0x77a   :  { %v2124_v15 = vadd.f32 %v2123_v58, %v1947_v56 }
 0x77b   :  { %v2183_v2 = vcombine.high %v2129_v57, %v2129_v57  ;;  %v2190_v4 = vrot.slane %v2129_v57, %v5622_v34 }
 0x77c   :  { %v2134_v28 = vcombine.high %v2124_v15, %v2124_v15  ;;  %v2141_v61 = vrot.slane %v2124_v15, %v5622_v34 }
 0x77d   :  { %v2197_v63 = vrot.slane %v2183_v2, %v5622_v34  ;;  %v2198_v1 = vcombine.high %v2190_v4, %v2190_v4  ;;  %v2206_v5 = vrot.slane %v2190_v4, %v5622_v34 }
 0x77e   :  { %v2148_v6 = vrot.slane %v2134_v28, %v5622_v34  ;;  %v2149_v7 = vcombine.high %v2141_v61, %v2141_v61  ;;  %v2157_v0 = vrot.slane %v2141_v61, %v5622_v34  ;;  %v2340_v28 = vrot.slane %v5689_v20, %v5613_v22  ;;  %v2654_v61 = vld [vmem:[%s6361_s3 + $0x8] sm:$0xff] }
 0x77f   :  { %v2199_v36 = vcombine.high %v2197_v63, %v2197_v63  ;;  %v2220_v8 = vrot.slane %v2198_v1, %v5622_v34  ;;  %v2228_v10 = vcombine.high %v2206_v5, %v2206_v5  ;;  %v2213_v12 = vrot.slane %v2197_v63, %v5622_v34  ;;  %v2655_v63 = vld [vmem:[%s6361_s3 + $0x28] sm:$0xff] }
 0x780   :  { %v2150_v62 = vcombine.high %v2148_v6, %v2148_v6  ;;  %v2164_v19 = vrot.slane %v2148_v6, %v5622_v34  ;;  %v2171_v11 = vrot.slane %v2149_v7, %v5622_v34  ;;  %v5957_v1 = vpack.i.bf16 %v2655_v63, %v2654_v61 }
 0x781   :  { %v2227_v13 = vrot.slane %v2199_v36, %v5622_v34  ;;  %v2229_v14 = vcombine.high %v2220_v8, %v2220_v8  ;;  %v2279_v31 = vcombine.low %v2220_v8, %v2228_v10  ;;  %v2333_v6 = vrot.slane %v5689_v20, %v5610_v21  ;;  %v2656_v36 = vld [vmem:[%s6361_s3 + $0x48] sm:$0xff] }
 0x782   :  { %v2178_v23 = vrot.slane %v2150_v62, %v5622_v34  ;;  %v2180_v24 = vcombine.high %v2164_v19, %v2164_v19  ;;  %v2230_v25 = vcombine.low %v2157_v0, %v2171_v11  ;;  %v4777_v30 = vcombine.high %v2157_v0, %v2171_v11  ;;  %v2657_v8 = vld [vmem:[%s6361_s3 + $0x68] sm:$0xff] }
 0x783   :  { %v2280_v33 = vcombine.low %v2229_v14, %v2213_v12  ;;  %v2308_v42 = vrot.slane %v2227_v13, %v5622_v34  ;;  %v2294_v54 = vrot.slane %v2279_v31, %v5622_v34  ;;  %v5971_v62 = vpack.i.bf16 %v2657_v8, %v2656_v36 }
 0x784   :  { %v2182_v35 = vcombine.high %v2178_v23, %v2178_v23  ;;  %v2232_v37 = vcombine.low %v2164_v19, %v2178_v23  ;;  %v2239_v44 = vrot.slane %v2230_v25, %v5622_v34  ;;  %v2246_v48 = vrot.slane %v4777_v30, %v5622_v34 }
 0x785   :  { %v2301_v9 = vrot.slane %v2280_v33, %v5622_v34  ;;  %v2260_v50 = vrot.slane %v2180_v24, %v5622_v34  ;;  %v5194_v20 = vpack.c.bf16 %v2655_v63, %v2654_v61  ;;  %v5198_v0 = vpack.c.bf16 %v2657_v8, %v2656_v36 }
 0x786   :  { %v2253_v49 = vrot.slane %v2232_v37, %v5622_v34  ;;  %v2261_v51 = vcombine.low %v2239_v44, %v2246_v48  ;;  %v2278_v46 = vcombine.low %v2182_v35, %v2206_v5 }
 0x787   :  { %v2310_v39 = vcombine.low %v2301_v9, %v2308_v42  ;;  %5195 = vmatprep.subr.bf16.mxu1 %v5194_v20 }
 0x788   :  { %v2262_v55 = vcombine.low %v2253_v49, %v2260_v50  ;;  %v2287_v53 = vrot.slane %v2278_v46, %v5622_v34  ;;  %v2269_v52 = vrot.slane %v2261_v51, %v5622_v34  ;;  %5197 = vmatpush3.bf16.msra.mxu1 %v5194_v20 }
 0x789   :  { %v2324_v18 = vrot.slane %v2310_v39, %v5622_v34  ;;  %5199 = vmatprep.subr.bf16.mxu1 %v5198_v0 }
 0x78a   :  { %v2276_v38 = vrot.slane %v2262_v55, %v5622_v34  ;;  %v2309_v59 = vcombine.low %v2287_v53, %v2294_v54 }
 0x78c   :  { %v2277_v29 = vcombine.low %v2269_v52, %v2276_v38  ;;  %v2317_v17 = vrot.slane %v2309_v59, %v5622_v34  ;;  %5201 = vmatpush3.bf16.msra.mxu1 %v5198_v0 }
 0x78d   :  { %5210 = vmatprep.subr.bf16.mxu1 %v5416_v3 }
 0x78e   :  { %v5931_v27 = vadd.f32 %v2277_v29, %v5619_v32  ;;  %v2325_v56 = vcombine.low %v2317_v17, %v2324_v18 }
 0x790   :  { %v2345_v47 = vsel %vm2344_vm10, %v5931_v27, 0.0  ;;  %v5936_v57 = vadd.f32 %v2325_v56, %v5629_v45  ;;  %v2354_v2 = vmul.f32 %v5931_v27, %v5931_v27  ;;  %v5400_v45 = vld.sshfl [vmem:[%s6359_s1 + $0x10] sm:$0x11 pattern:$0x75316420] }
 0x791   :  { %2346 = vadd.xlane.f32.xlu1 %v2345_v47  ;;  %v3046_v5 = vcombine.high %v5400_v45, %v5400_v45  ;;  %v3053_v10 = vrot.slane %v5400_v45, %v5622_v34 }
 0x792   :  { %v2348_v58 = vsel %vm2344_vm10, %v5936_v57, 0.0  ;;  %v2355_v15 = vmul.f32 %v5936_v57, %v5936_v57  ;;  %v2356_v4 = vsel %vm2344_vm10, %v2354_v2, 0.0 }
 0x793   :  { %2349 = vadd.xlane.f32.xlu0 %v2348_v58  ;;  %v3060_v7 = vrot.slane %v3046_v5, %v5622_v34 }
 0x794   :  { %v2359_v32 = vsel %vm2344_vm10, %v2355_v15, 0.0 }
 0x795   :  { %2360 = vadd.xlane.f32.xlu1 %v2359_v32 }
 0x797   :  { %2357 = vadd.xlane.f32.xlu0 %v2356_v4 }
 0x7a6   :  { %2342 = vbcast.lane.b32.xlu1 %v2340_v28, 256 }
 0x7aa   :  { %5282 = vrot.lane.b32.xlu1 %v5957_v1, %s5421_s13 }
 0x7ad   :  { %2335 = vbcast.lane.b32.xlu0 %v2333_v6, 256 }
 0x7ae   :  { %3070 = vperm.xlu1 %5287, %v3060_v7  }
 0x7b1   :  { %3062 = vperm.xlu0 %5286, %v3053_v10  }
 0x7b2   :  { %5289 = vrot.lane.b32.xlu1 %v5971_v62, %s5421_s13 }
 0x7b5   :  { %5294 = vrot.lane.b32.xlu0 %v5957_v1, %s5422_s14 }
 0x7b6   :  { %5299 = vrot.lane.b32.xlu1 %v5971_v62, %s5422_s14 }
 0x81e   :  { %v2347_v19 = vpop.xlane.xlu1 %2346 }
 0x81f   :  { %v2351_v12 = vsel %vm1532_vm7, %v2347_v19, 0.0 }
 0x820   :  { %v2350_v11 = vpop.xlane.xlu0 %2349 }
 0x821   :  { %v2352_v13 = vsel %vm1532_vm7, %v2350_v11, 0.0 }
 0x822   :  { %v2353_v14 = vadd.f32 %v2352_v13, %v2351_v12  ;;  %v2361_v23 = vpop.xlane.xlu1 %2360 }
 0x823   :  { %v2363_v30 = vsel %vm1532_vm7, %v2361_v23, 0.0 }
 0x824   :  { %v2365_v24 = vmul.f32 0.015625, %v2353_v14  ;;  %v2358_v25 = vpop.xlane.xlu0 %2357 }
 0x825   :  { %v2362_v31 = vsel %vm1532_vm7, %v2358_v25, 0.0 }
 0x826   :  { %v2364_v33 = vadd.f32 %v2363_v30, %v2362_v31  ;;  %v2343_v35 = vpop.permute.xlu1 %2342  ;;  %v2367_v37 = vmul.f32 %v2365_v24, %v2365_v24  ;;  %v2369_v59 = vsub.f32 %v5931_v27, %v2365_v24  ;;  %v2370_v29 = vsub.f32 %v5936_v57, %v2365_v24 }
 0x828   :  { %v2366_v44 = vmul.f32 0.015625, %v2364_v33  ;;  %v2336_v52 = vpop.permute.xlu0 %2335 }
 0x82a   :  { %v2368_v48 = vsub.f32 %v2366_v44, %v2367_v37  ;;  %v5283_v9 = vpop.permute.xlu1 %5282 }
 0x82b   :  { %v5285_v42 = vunpack.i.h.bf16 %v5283_v9  ;;  %v5284_v49 = vunpack.i.l.bf16 %v5283_v9 }
 0x82c   :  { %v2371_v50 = vadd.f32 1e-05, %v2368_v48 }
 0x82d   :  { %v5202_v51 = vpack.c.bf16 %v5285_v42, %v5284_v49  ;;  %v6016_v42 = vld [vmem:[%s6361_s3 + $0x80] sm:$0xff] }
 0x82e   :  { %5371 = vrsqrt.f32 %v2371_v50  ;;  %v3071_v46 = vpop.permute.xlu1 %3070  ;;  %v3080_v49 = vrot.slane %v6016_v42, 1 }
 0x82f   :  { %5203 = vmatprep.subr.bf16.mxu0 %v5202_v51  ;;  %v3076_v5 = vrot.slane %v3071_v46, %v5548_v41 }
 0x830   :  { %5205 = vmatpush3.bf16.msra.mxu0 %v5202_v51  ;;  %v3063_v6 = vpop.permute.xlu0 %3062 }
 0x831   :  { %v3068_v11 = vrot.slane %v3063_v6, %v5548_v41  ;;  %v3078_v46 = vmul.f32 %v6016_v42, %v3076_v5 }
 0x832   :  { %v5290_v54 = vpop.permute.xlu1 %5289 }
 0x833   :  { %v5292_v55 = vunpack.i.h.bf16 %v5290_v54  ;;  %v5291_v53 = vunpack.i.l.bf16 %v5290_v54  ;;  %v3077_v54 = vmul.f32 %v6016_v42, %v3068_v11 }
 0x834   :  { %v5295_v50 = vpop.permute.xlu0 %5294 }
 0x835   :  { %v5206_v39 = vpack.c.bf16 %v5292_v55, %v5291_v53 }
 0x837   :  { %5207 = vmatprep.subr.bf16.mxu0 %v5206_v39 }
 0x838   :  { %v5372_v38 = vpop.eup %5371  ;;  %5209 = vmatpush3.bf16.msra.mxu0 %v5206_v39 }
 0x839   :  { %v2373_v17 = vmul.f32 %v5372_v38, %v2336_v52  ;;  %5216 = vmatprep.subr.bf16.mxu0 %v5416_v3 }
 0x83b   :  { %v2374_v18 = vmul.f32 %v2373_v17, %v2369_v59  ;;  %v2375_v56 = vmul.f32 %v2373_v17, %v2370_v29  ;;  %v5297_v59 = vunpack.i.h.bf16 %v5295_v50  ;;  %v5296_v29 = vunpack.i.l.bf16 %v5295_v50 }
 0x83d   :  { %v5987_v47 = vadd.f32 %v2374_v18, %v2343_v35  ;;  %v5989_v58 = vadd.f32 %v2375_v56, %v2343_v35  ;;  %v5300_v18 = vpop.permute.xlu1 %5299 }
 0x83f   :  { %v2380_v15 = vcombine.high %v5987_v47, %v5987_v47  ;;  %v2387_v2 = vrot.slane %v5987_v47, %v5622_v34  ;;  %v2428_v27 = vcombine.high %v5989_v58, %v5989_v58  ;;  %v2435_v57 = vrot.slane %v5989_v58, %v5622_v34 }
 0x841   :  { %v2394_v32 = vrot.slane %v2380_v15, %v5622_v34  ;;  %v2395_v4 = vcombine.high %v2387_v2, %v2387_v2  ;;  %v2442_v45 = vrot.slane %v2428_v27, %v5622_v34  ;;  %v2403_v28 = vrot.slane %v2387_v2, %v5622_v34 }
 0x842   :  { %v2443_v61 = vcombine.high %v2435_v57, %v2435_v57  ;;  %v2451_v63 = vrot.slane %v2435_v57, %v5622_v34  ;;  %v3083_v27 = vadd.f32 %v3080_v49, %v3078_v46  ;;  %v3082_v57 = vadd.f32 %v3080_v49, %v3077_v54 }
 0x843   :  { %v2396_v7 = vcombine.high %v2394_v32, %v2394_v32  ;;  %v2410_v36 = vrot.slane %v2394_v32, %v5622_v34  ;;  %v2417_v8 = vrot.slane %v2395_v4, %v5622_v34  ;;  %v2444_v10 = vcombine.high %v2442_v45, %v2442_v45 }
 0x844   :  { %v2458_v20 = vrot.slane %v2442_v45, %v5622_v34  ;;  %v2465_v0 = vrot.slane %v2443_v61, %v5622_v34  ;;  %v2473_v19 = vcombine.high %v2451_v63, %v2451_v63  ;;  %v5211_v45 = vpack.c.bf16 %v5297_v59, %v5296_v29 }
 0x845   :  { %v2424_v12 = vrot.slane %v2396_v7, %v5622_v34  ;;  %v2426_v13 = vcombine.high %v2410_v36, %v2410_v36  ;;  %v2472_v14 = vrot.slane %v2444_v10, %v5622_v34  ;;  %v2484_v23 = vcombine.low %v2403_v28, %v2417_v8  ;;  %v6040_v10 = vld [vmem:[%s6361_s3 + $0xa0] sm:$0xff] }
 0x846   :  { %v2474_v24 = vcombine.high %v2458_v20, %v2458_v20  ;;  %v2475_v25 = vcombine.high %v2465_v0, %v2465_v0  ;;  %v4778_v30 = vcombine.high %v2403_v28, %v2417_v8  ;;  %v2533_v31 = vcombine.low %v2465_v0, %v2473_v19 }
 0x847   :  { %v2486_v33 = vcombine.low %v2410_v36, %v2424_v12  ;;  %v2487_v35 = vcombine.low %v2426_v13, %v2451_v63  ;;  %v2494_v37 = vrot.slane %v2484_v23, %v5622_v34  ;;  %v5302_v28 = vunpack.i.h.bf16 %v5300_v18  ;;  %v6047_v13 = vld [vmem:[%s6361_s3 + $0xc0] sm:$0xff] }
 0x848   :  { %v2501_v44 = vrot.slane %v4778_v30, %v5622_v34  ;;  %v2534_v48 = vcombine.low %v2475_v25, %v2458_v20  ;;  %v2535_v9 = vcombine.low %v2472_v14, %v2474_v24  ;;  %v2542_v53 = vrot.slane %v2533_v31, %v5622_v34 }
 0x849   :  { %v2515_v51 = vrot.slane %v2487_v35, %v5622_v34  ;;  %v2508_v55 = vrot.slane %v2486_v33, %v5622_v34  ;;  %v5301_v61 = vunpack.i.l.bf16 %v5300_v18  ;;  %v3095_v6 = vrot.slane %v3083_v27, 5 }
 0x84a   :  { %v2549_v39 = vrot.slane %v2534_v48, %v5622_v34  ;;  %v2516_v52 = vcombine.low %v2494_v37, %v2501_v44  ;;  %v2556_v38 = vrot.slane %v2535_v9, %v5622_v34  ;;  %v3094_v7 = vrot.slane %v3082_v57, 6 }
 0x84b   :  { %v2517_v17 = vcombine.low %v2508_v55, %v2515_v51  ;;  %v5214_v36 = vpack.c.bf16 %v5302_v28, %v5301_v61  ;;  %v2483_v20 = vrot.slane %v6040_v10, %v5651_v26  ;;  %v3091_v24 = vrot.slane %v6047_v13, %v5548_v41 }
 0x84c   :  { %v2557_v56 = vcombine.low %v2542_v53, %v2549_v39  ;;  %v2524_v15 = vrot.slane %v2516_v52, %v5622_v34  ;;  %v2571_v4 = vrot.slane %v2556_v38, %v5622_v34  ;;  %v3096_v8 = vsel %vm160_vm2, %v3095_v6, %v3094_v7 }
 0x84d   :  { %v2531_v2 = vrot.slane %v2517_v17, %v5622_v34  ;;  %v6075_v52 = vsub.s32 3, %v5545_v40 }
 0x84e   :  { %v2564_v32 = vrot.slane %v2557_v56, %v5622_v34 }
 0x84f   :  { %v2532_v63 = vcombine.low %v2524_v15, %v2531_v2  ;;  %v2661_v38 = vrot.slane %v6040_v10, %v6075_v52 }
 0x850   :  { %v2572_v5 = vcombine.low %v2564_v32, %v2571_v4 }
 0x851   :  { %4994 = vmatprep.mubr.msk.f32.mxu1 %vm218_vm5, %v2532_v63 }
 0x852   :  { %4995 = vmatmul.mubr.msk.f32.vlgmr.msra.gmra.mrb[20].mxu1 %vm218_vm5, %v2572_v5 }
 0x853   :  { %5212 = vmatpush3.bf16.msra.mxu1 %v5211_v45  ;;  %5016 = vmatprep.mubr.msk.f32.mxu1 %vm5417_vm4, %v5418_v16 }
 0x854   :  { %5213 = vmatprep.subr.bf16.mxu1 %v5416_v3 }
 0x857   :  { %5215 = vmatpush3.bf16.msra.mxu1 %v5214_v36 }
 0x85a   :  { %5017 = vmatmul.mubr.msk.f32.vlgmr.msra.gmra.mrb[22].mxu1 %vm218_vm5, %v3096_v8 }
 0x925   :  { %v4996_v0 = vpop.f32.mrb[20].mxu1 }
 0x926   :  { %v2649_v19 = vadd.f32 %v4996_v0, %v2483_v20  ;;  %v2643_v11 = vpop.f32.mrb[21].mxu1 }
 0x927   :  { %v2644_v12 = vadd.f32 %v2643_v11, %v2483_v20 }
 0x928   :  { %v2653_v23 = vmax.f32 %v2649_v19, 0.0 }
 0x929   :  { %v2652_v14 = vmax.f32 %v2644_v12, 0.0 }
 0x92b   :  { %5005 = vmatprep.mubr.msk.f32.mxu0 %vm218_vm5, %v2652_v14 }
 0x92c   :  { %5006 = vmatmul.mubr.msk.f32.vlgmr.msra.gmra.mrb[4].mxu0 %vm218_vm5, %v2653_v23 }
 0x92d   :  { %v3181_v25 = vpop.f32.mrb[22].mxu1  ;;  %5027 = vmatprep.mubr.msk.f32.mxu0 %vm5417_vm4, %v5418_v16 }
 0x92e   :  { %v3182_v30 = vadd.f32 %v3181_v25, %v3091_v24  ;;  %v5018_v31 = vpop.f32.mrb[23].mxu1 }
 0x930   :  { %v3192_v33 = vrot.slane %v3182_v30, %v5622_v34 }
 0x932   :  { %v3193_v35 = vcombine.high %v3192_v33, %v3192_v33  ;;  %v3200_v37 = vrot.slane %v3192_v33, %v5622_v34 }
 0x934   :  { %v3207_v44 = vrot.slane %v3193_v35, %v5622_v34  ;;  %v3211_v48 = vrot.slane %v3200_v37, %v5548_v41 }
 0x936   :  { %v6059_v9 = vadd.f32 %v3211_v48, %v3082_v57  ;;  %v3215_v49 = vrot.slane %v3207_v44, %v5548_v41 }
 0x938   :  { %v3223_v50 = vsel %vm3222_vm11, %v6059_v9, 0.0  ;;  %v6064_v51 = vadd.f32 %v3215_v49, %v3083_v27  ;;  %v3233_v46 = vmul.f32 %v6059_v9, %v6059_v9 }
 0x939   :  { %3224 = vadd.xlane.f32.xlu0 %v3223_v50 }
 0x93a   :  { %v3226_v54 = vsel %vm3222_vm11, %v6064_v51, 0.0  ;;  %v3235_v55 = vsel %vm3222_vm11, %v3233_v46, 0.0  ;;  %v3234_v53 = vmul.f32 %v6064_v51, %v6064_v51 }
 0x93b   :  { %3227 = vadd.xlane.f32.xlu1 %v3226_v54 }
 0x93c   :  { %v3238_v39 = vsel %vm3222_vm11, %v3234_v53, 0.0 }
 0x93d   :  { %3236 = vadd.xlane.f32.xlu0 %v3235_v55 }
 0x941   :  { %3239 = vadd.xlane.f32.xlu0 %v3238_v39 }
 0x9ff   :  { %v5007_v59 = vpop.f32.mrb[4].mxu0 }
 0xa00   :  { %v2756_v29 = vadd.f32 %v5007_v59, %v2661_v38  ;;  %v2750_v17 = vpop.f32.mrb[5].mxu0 }
 0xa01   :  { %v2751_v18 = vadd.f32 %v2750_v17, %v2661_v38 }
 0xa02   :  { %v2810_v56 = vcombine.high %v2756_v29, %v2756_v29  ;;  %v2817_v15 = vrot.slane %v2756_v29, %v5622_v34 }
 0xa03   :  { %v2761_v2 = vcombine.high %v2751_v18, %v2751_v18  ;;  %v2768_v27 = vrot.slane %v2751_v18, %v5622_v34 }
 0xa04   :  { %v2824_v57 = vrot.slane %v2810_v56, %v5622_v34  ;;  %v2825_v32 = vcombine.high %v2817_v15, %v2817_v15  ;;  %v2833_v4 = vrot.slane %v2817_v15, %v5622_v34 }
 0xa05   :  { %v2775_v45 = vrot.slane %v2761_v2, %v5622_v34  ;;  %v2776_v28 = vcombine.high %v2768_v27, %v2768_v27  ;;  %v2784_v7 = vrot.slane %v2768_v27, %v5622_v34 }
 0xa06   :  { %v2826_v61 = vcombine.high %v2824_v57, %v2824_v57  ;;  %v2847_v63 = vrot.slane %v2825_v32, %v5622_v34  ;;  %v2855_v5 = vcombine.high %v2833_v4, %v2833_v4  ;;  %v2840_v20 = vrot.slane %v2824_v57, %v5622_v34 }
 0xa07   :  { %v2777_v6 = vcombine.high %v2775_v45, %v2775_v45  ;;  %v2791_v36 = vrot.slane %v2775_v45, %v5622_v34  ;;  %v2798_v8 = vrot.slane %v2776_v28, %v5622_v34 }
 0xa08   :  { %v2854_v0 = vrot.slane %v2826_v61, %v5622_v34  ;;  %v2856_v19 = vcombine.high %v2847_v63, %v2847_v63  ;;  %v2906_v24 = vcombine.low %v2847_v63, %v2855_v5  ;;  %v2966_v61 = vsub.s32 7, %v5545_v40 }
 0xa09   :  { %v2805_v11 = vrot.slane %v2777_v6, %v5622_v34  ;;  %v2807_v12 = vcombine.high %v2791_v36, %v2791_v36  ;;  %v2857_v14 = vcombine.low %v2784_v7, %v2798_v8  ;;  %v4783_v23 = vcombine.high %v2784_v7, %v2798_v8  ;;  %v6132_v6 = vld [vmem:[%s6361_s3 + $0x10] sm:$0xff]  ;;  %v3225_v8 = vpop.xlane.xlu0 %3224 }
 0xa0a   :  { %v2907_v25 = vcombine.low %v2856_v19, %v2840_v20  ;;  %v2935_v44 = vrot.slane %v2854_v0, %v5622_v34  ;;  %v2921_v54 = vrot.slane %v2906_v24, %v5622_v34  ;;  %v2967_v5 = vrot.slane %v6040_v10, %v2966_v61  ;;  %v3228_v0 = vpop.xlane.xlu1 %3227 }
 0xa0b   :  { %v2809_v30 = vcombine.high %v2805_v11, %v2805_v11  ;;  %v2859_v31 = vcombine.low %v2791_v36, %v2805_v11  ;;  %v2866_v33 = vrot.slane %v2857_v14, %v5622_v34  ;;  %v2873_v35 = vrot.slane %v4783_v23, %v5622_v34 }
 0xa0c   :  { %v2928_v37 = vrot.slane %v2907_v25, %v5622_v34  ;;  %v2887_v49 = vrot.slane %v2807_v12, %v5622_v34  ;;  %v3231_v11 = vsel %vm3229_vm12, %v3228_v0, 0.0  ;;  %v3230_v12 = vsel %vm3229_vm12, %v3225_v8, 0.0 }
 0xa0d   :  { %v2880_v48 = vrot.slane %v2859_v31, %v5622_v34  ;;  %v2888_v50 = vcombine.low %v2866_v33, %v2873_v35  ;;  %v2905_v46 = vcombine.low %v2809_v30, %v2833_v4  ;;  %v3237_v20 = vpop.xlane.xlu0 %3236  ;;  %v3232_v23 = vadd.f32 %v3231_v11, %v3230_v12 }
 0xa0e   :  { %v2937_v39 = vcombine.low %v2928_v37, %v2935_v44  ;;  %v3241_v24 = vsel %vm3229_vm12, %v3237_v20, 0.0 }
 0xa0f   :  { %v2889_v55 = vcombine.low %v2880_v48, %v2887_v49  ;;  %v2914_v53 = vrot.slane %v2905_v46, %v5622_v34  ;;  %v2896_v38 = vrot.slane %v2888_v50, %v5622_v34  ;;  %v3244_v30 = vmul.f32 0.015625, %v3232_v23 }
 0xa10   :  { %v2951_v56 = vrot.slane %v2937_v39, %v5622_v34  ;;  %v3252_v48 = vstv %s3220_s17 }
 0xa11   :  { %v2903_v59 = vrot.slane %v2889_v55, %v5622_v34  ;;  %v2936_v29 = vcombine.low %v2914_v53, %v2921_v54  ;;  %v3240_v19 = vpop.xlane.xlu0 %3239  ;;  %v3246_v33 = vmul.f32 %v3244_v30, %v3244_v30 }
 0xa12   :  { %v3242_v14 = vsel %vm3229_vm12, %v3240_v19, 0.0 }
 0xa13   :  { %v2904_v17 = vcombine.low %v2896_v38, %v2903_v59  ;;  %v2944_v18 = vrot.slane %v2936_v29, %v5622_v34  ;;  %v3243_v25 = vadd.f32 %v3242_v14, %v3241_v24  ;;  %v3248_v38 = vsub.f32 %v6059_v9, %v3244_v30 }
 0xa14   :  { %v3249_v59 = vsub.f32 %v6064_v51, %v3244_v30  ;;  %v213_v14 = vrot.slane %v6016_v42, %v6075_v52 }
 0xa15   :  { %v6104_v15 = vadd.f32 %v2904_v17, %v5987_v47  ;;  %v2952_v2 = vcombine.low %v2944_v18, %v2951_v56  ;;  %v3245_v31 = vmul.f32 0.015625, %v3243_v25 }
 0xa16   :  { %v288_v24 = vadd.f32 %v5684_v60, %v213_v14 }
 0xa17   :  { %v2971_v27 = vsel %vm2344_vm10, %v6104_v15, 0.0  ;;  %v6109_v57 = vadd.f32 %v2952_v2, %v5989_v58  ;;  %v2980_v32 = vmul.f32 %v6104_v15, %v6104_v15  ;;  %v2959_v58 = vsub.s32 6, %v5545_v40 }
 0xa18   :  { %2972 = vadd.xlane.f32.xlu1 %v2971_v27  ;;  %v3247_v35 = vsub.f32 %v3245_v31, %v3246_v33  ;;  %v3011_v30 = vrot.slane %v288_v24, %v5622_v34 }
 0xa19   :  { %v2974_v4 = vsel %vm2344_vm10, %v6109_v57, 0.0  ;;  %v2981_v45 = vmul.f32 %v6109_v57, %v6109_v57  ;;  %v2982_v47 = vsel %vm2344_vm10, %v2980_v32, 0.0  ;;  %v2960_v63 = vrot.slane %v6040_v10, %v2959_v58  ;;  %v6149_v10 = vld [vmem:[%s6361_s3 + $0x70] sm:$0xff] }
 0xa1a   :  { %2975 = vadd.xlane.f32.xlu0 %v2974_v4  ;;  %v3250_v37 = vadd.f32 1e-05, %v3247_v35  ;;  %v3019_v60 = vrot.slane %v3011_v30, %v5622_v34 }
 0xa1b   :  { %v2985_v28 = vsel %vm2344_vm10, %v2981_v45, 0.0  ;;  %v3256_v45 = vstv %s4785_s18 }
 0xa1c   :  { %2983 = vadd.xlane.f32.xlu1 %v2982_v47  ;;  %5373 = vrsqrt.f32 %v3250_v37 }
 0xa1e   :  { %2986 = vadd.xlane.f32.xlu0 %v2985_v28 }
 0xa26   :  { %v5374_v44 = vpop.eup %5373 }
 0xa27   :  { %v3253_v46 = vmul.f32 %v5374_v44, %v3252_v48  ;;  %v3012_v44 = vcombine.high %v3011_v30, %v3011_v30 }
 0xa29   :  { %v3254_v2 = vmul.f32 %v3253_v46, %v3248_v38  ;;  %v3255_v27 = vmul.f32 %v3253_v46, %v3249_v59 }
 0xa2b   :  { %v6166_v9 = vadd.f32 %v3256_v45, %v3255_v27  ;;  %v3392_v27 = vrot.slane %v6047_v13, %v5651_v26 }
 0xa2d   :  { %5304 = vrot.lane.b32.xlu1 %v5957_v1, %s5424_s16  ;;  %v6137_v1 = vld [vmem:[%s6361_s3 + $0x30] sm:$0xff]  ;;  %v3270_v12 = vrot.slane %v6166_v9, 5 }
 0xa2e   :  { %v5222_v7 = vpack.c.bf16 %v6137_v1, %v6132_v6 }
 0xa30   :  { %5223 = vmatprep.subr.bf16.mxu1 %v5222_v7 }
 0xa31   :  { %5309 = vrot.lane.b32.xlu1 %v5971_v62, %s5424_s16  ;;  %5225 = vmatpush3.bf16.msra.mxu1 %v5222_v7  ;;  %v6144_v62 = vld [vmem:[%s6361_s3 + $0x50] sm:$0xff]  ;;  %v6164_v7 = vadd.f32 %v3256_v45, %v3254_v2 }
 0xa32   :  { %v5226_v36 = vpack.c.bf16 %v6149_v10, %v6144_v62 }
 0xa33   :  { %v3269_v11 = vrot.slane %v6164_v7, 6 }
 0xa34   :  { %2962 = vbcast.lane.b32.xlu0 %v2960_v63, 256  ;;  %5227 = vmatprep.subr.bf16.mxu1 %v5226_v36 }
 0xa35   :  { %2969 = vbcast.lane.b32.xlu1 %v2967_v5, 256  ;;  %5229 = vmatpush3.bf16.msra.mxu1 %v5226_v36  ;;  %v3271_v23 = vsel %vm160_vm2, %v3270_v12, %v3269_v11 }
 0xa36   :  { %5041 = vmatprep.subr.mxu1 %v5418_v16 }
 0xaa5   :  { %v2973_v49 = vpop.xlane.xlu1 %2972 }
 0xaa6   :  { %v2977_v54 = vsel %vm1532_vm7, %v2973_v49, 0.0 }
 0xaa7   :  { %v2976_v50 = vpop.xlane.xlu0 %2975 }
 0xaa8   :  { %v2978_v55 = vsel %vm1532_vm7, %v2976_v50, 0.0 }
 0xaa9   :  { %v2979_v53 = vadd.f32 %v2978_v55, %v2977_v54  ;;  %v2984_v39 = vpop.xlane.xlu1 %2983  ;;  %v3026_v54 = vrot.slane %v3012_v44, %v5622_v34 }
 0xaaa   :  { %v2988_v18 = vsel %vm1532_vm7, %v2984_v39, 0.0 }
 0xaab   :  { %v2991_v29 = vmul.f32 0.015625, %v2979_v53  ;;  %v2987_v17 = vpop.xlane.xlu0 %2986 }
 0xaac   :  { %v2989_v56 = vsel %vm1532_vm7, %v2987_v17, 0.0 }
 0xaad   :  { %v2990_v32 = vadd.f32 %v2989_v56, %v2988_v18  ;;  %v5305_v4 = vpop.permute.xlu1 %5304  ;;  %v2993_v61 = vmul.f32 %v2991_v29, %v2991_v29  ;;  %v2995_v33 = vsub.f32 %v6104_v15, %v2991_v29  ;;  %v2996_v42 = vsub.f32 %v6109_v57, %v2991_v29 }
 0xaae   :  { %v5307_v47 = vunpack.i.h.bf16 %v5305_v4  ;;  %v5306_v28 = vunpack.i.l.bf16 %v5305_v4  ;;  %v3266_v15 = vrot.slane %v6047_v13, %v5554_v43 }
 0xaaf   :  { %v2992_v63 = vmul.f32 0.015625, %v2990_v32  ;;  %v2963_v25 = vpop.permute.xlu0 %2962 }
 0xab0   :  { %v5217_v5 = vpack.c.bf16 %v5307_v47, %v5306_v28 }
 0xab1   :  { %v2994_v51 = vsub.f32 %v2992_v63, %v2993_v61  ;;  %v5310_v36 = vpop.permute.xlu1 %5309 }
 0xab2   :  { %v5312_v8 = vunpack.i.h.bf16 %v5310_v36  ;;  %v5311_v20 = vunpack.i.l.bf16 %v5310_v36  ;;  %5218 = vmatpush3.bf16.msra.mxu0 %v5217_v5 }
 0xab3   :  { %v2997_v0 = vadd.f32 1e-05, %v2994_v51  ;;  %5219 = vmatprep.subr.bf16.mxu0 %v5416_v3 }
 0xab4   :  { %v5220_v19 = vpack.c.bf16 %v5312_v8, %v5311_v20 }
 0xab5   :  { %5375 = vrsqrt.f32 %v2997_v0  ;;  %v2970_v37 = vpop.permute.xlu1 %2969 }
 0xab6   :  { %5221 = vmatpush3.bf16.msra.mxu0 %v5220_v19 }
 0xab7   :  { %5051 = vmatprep.subr.mxu0 %v5418_v16 }
 0xab9   :  { %5028 = vmatmul.mubr.msk.f32.vlgmr.msra.gmra.mrb[6].mxu0 %vm218_vm5, %v3271_v23 }
 0xaba   :  { %5053 = vmatprep.mubr.msk.f32.mxu0 %vm5417_vm4, %v5418_v16 }
 0xabf   :  { %v5376_v31 = vpop.eup %5375 }
 0xac0   :  { %v2999_v35 = vmul.f32 %v5376_v31, %v2963_v25 }
 0xac2   :  { %v3000_v48 = vmul.f32 %v2999_v35, %v2995_v33  ;;  %v3001_v49 = vmul.f32 %v2999_v35, %v2996_v42 }
 0xac4   :  { %v3002_v50 = vadd.f32 %v3000_v48, %v2970_v37  ;;  %v3003_v46 = vadd.f32 %v3001_v49, %v2970_v37 }
 0xac6   :  { %v3031_v55 = vrot.slane %v3002_v50, 7  ;;  %v3032_v53 = vrot.slane %v3003_v46, 7 }
 0xac8   :  { %v3036_v39 = vsel %vm3035_vm13, %v3019_v60, %v3031_v55  ;;  %v3037_v38 = vsel %vm3035_vm13, %v3026_v54, %v3032_v53 }
 0xac9   :  { %5038 = vmatprep.mubr.msk.f32.mxu1 %vm218_vm5, %v3036_v39 }
 0xaca   :  { %5039 = vmatmul.mubr.msk.f32.vlgmr.msra.gmra.mrb[24].mxu1 %vm218_vm5, %v3037_v38  ;;  %v6234_v38 = vpack.i.bf16 %v6137_v1, %v6132_v6 }
 0xacb   :  { %5043 = vmatprep.mubr.msk.f32.mxu1 %vm5417_vm4, %v5418_v16 }
 0xb8c   :  { %v3356_v57 = vpop.f32.mrb[6].mxu0 }
 0xb8d   :  { %v3357_v59 = vadd.f32 %v3356_v57, %v3266_v15  ;;  %v5029_v29 = vpop.f32.mrb[7].mxu0 }
 0xb8f   :  { %v3367_v17 = vrot.slane %v3357_v59, %v5622_v34 }
 0xb91   :  { %v3368_v18 = vcombine.high %v3367_v17, %v3367_v17  ;;  %v3375_v2 = vrot.slane %v3367_v17, %v5622_v34 }
 0xb93   :  { %v3382_v56 = vrot.slane %v3368_v18, %v5622_v34  ;;  %v3480_v47 = vmul.f32 0.25, %v3375_v2 }
 0xb95   :  { %3476 = vrot.lane.b32.xlu1 %v3382_v56, %s5420_s12  ;;  %v3481_v26 = vmul.f32 0.25, %v3382_v56 }
 0xb99   :  { %3474 = vrot.lane.b32.xlu1 %v3375_v2, %s5420_s12 }
 0xb9d   :  { %v5040_v32 = vpop.f32.mrb[24].mxu1 }
 0xb9e   :  { %v3471_v4 = vadd.f32 %v5040_v32, %v3392_v27  ;;  %v3465_v43 = vpop.f32.mrb[25].mxu1 }
 0xb9f   :  { %v3466_v45 = vadd.f32 %v3465_v43, %v3392_v27  ;;  %v5318_v27 = vpack.i.bf16 %v6149_v10, %v6144_v62 }
 0xba0   :  { %3896 = vrot.lane.b32.xlu1 %v3471_v4, %s5421_s13  ;;  %3488 = vrot.lane.b32.xlu0 %v3471_v4, %s5420_s12 }
 0xba1   :  { %5042 = vmatpush3.xpose.msk.msra.mxu1 %vm885_vm6, %v3466_v45 }
 0xba2   :  { %5046 = vmatprep.subr.mxu1 %v5418_v16 }
 0xba4   :  { %3486 = vrot.lane.b32.xlu0 %v3466_v45, %s5420_s12  ;;  %5044 = vmatmul.mubr.msk.f32.vlgmr.msra.gmra.mrb[26].mxu1 %vm885_vm6, %v3480_v47 }
 0xba5   :  { %5047 = vmatpush3.xpose.msk.msra.mxu1 %vm885_vm6, %v3471_v4  ;;  %5048 = vmatprep.mubr.msk.f32.mxu1 %vm5417_vm4, %v5418_v16 }
 0xba6   :  { %5056 = vmatprep.subr.mxu1 %v5418_v16 }
 0xba8   :  { %5049 = vmatmul.mubr.msk.f32.vlgmr.msra.gmra.mrb[28].mxu1 %vm885_vm6, %v3481_v26 }
 0xba9   :  { %5058 = vmatprep.mubr.msk.f32.mxu1 %vm5417_vm4, %v5418_v16 }
 0xc07   :  { %v3477_v28 = vpop.permute.xlu1 %3476 }
 0xc08   :  { %v3483_v5 = vmul.f32 0.25, %v3477_v28 }
 0xc0b   :  { %v3475_v61 = vpop.permute.xlu1 %3474 }
 0xc0c   :  { %v3482_v8 = vmul.f32 0.25, %v3475_v61 }
 0xc12   :  { %v3489_v63 = vpop.permute.xlu0 %3488  ;;  %v3897_v51 = vpop.permute.xlu1 %3896 }
 0xc13   :  { %5057 = vmatpush3.xpose.msk.msra.mxu1 %vm885_vm6, %v3489_v63 }
 0xc14   :  { %5066 = vmatprep.subr.mxu1 %v5418_v16 }
 0xc16   :  { %v3487_v36 = vpop.permute.xlu0 %3486  ;;  %5059 = vmatmul.mubr.msk.f32.vlgmr.msra.gmra.mrb[30].mxu1 %vm885_vm6, %v3483_v5 }
 0xc17   :  { %5052 = vmatpush3.xpose.msk.msra.mxu0 %vm885_vm6, %v3487_v36  ;;  %5067 = vmatpush3.msra.mxu1 %v3897_v51 }
 0xc18   :  { %5068 = vmatprep.mubr.msk.f32.mxu1 %vm5417_vm4, %v5418_v16  ;;  %5076 = vmatprep.subr.mxu1 %v5418_v16 }
 0xc19   :  { %5061 = vmatprep.subr.mxu0 %v5418_v16 }
 0xc1a   :  { %5054 = vmatmul.mubr.msk.f32.vlgmr.msra.gmra.mrb[8].mxu0 %vm885_vm6, %v3482_v8 }
 0xc1b   :  { %5063 = vmatprep.mubr.msk.f32.mxu0 %vm5417_vm4, %v5418_v16 }
 0xc77   :  { %v3561_v20 = vpop.f32.mrb[26].mxu1 }
 0xc78   :  { %v3790_v0 = vmul.f32 1.442695, %v3561_v20  ;;  %v5045_v19 = vpop.f32.mrb[27].mxu1 }
 0xc7a   :  { %5377 = vpow2.f32 %v3790_v0 }
 0xc7b   :  { %v3636_v11 = vpop.f32.mrb[28].mxu1 }
 0xc7c   :  { %v3792_v12 = vmul.f32 1.442695, %v3636_v11  ;;  %v5050_v14 = vpop.f32.mrb[29].mxu1 }
 0xc7e   :  { %5379 = vpow2.f32 %v3792_v12 }
 0xc84   :  { %v5378_v23 = vpop.eup %5377 }
 0xc85   :  { %v3799_v24 = vsel %vm3798_vm14, %v5378_v23, 0.0 }
 0xc86   :  { %3800 = vadd.xlane.f32.xlu1 %v3799_v24  ;;  %v4137_v24 = vrot.slane %v6047_v13, %v6075_v52 }
 0xc88   :  { %v5380_v25 = vpop.eup %5379 }
 0xc89   :  { %v3802_v30 = vsel %vm3798_vm14, %v5380_v25, 0.0 }
 0xc8a   :  { %3803 = vadd.xlane.f32.xlu0 %v3802_v30 }
 0xc97   :  { %4048 = vrot.lane.b32.xlu1 %v3489_v63, %s5421_s13 }
 0xc9b   :  { %3972 = vrot.lane.b32.xlu1 %v3487_v36, %s5421_s13 }
 0xc9f   :  { %5319 = vrot.lane.b32.xlu1 %v5318_v27, %s5422_s14 }
 0xce9   :  { %v3786_v31 = vpop.f32.mrb[30].mxu1 }
 0xcea   :  { %v3796_v33 = vmul.f32 1.442695, %v3786_v31  ;;  %v5060_v42 = vpop.f32.mrb[31].mxu1 }
 0xcec   :  { %5381 = vpow2.f32 %v3796_v33 }
 0xced   :  { %v3711_v35 = vpop.f32.mrb[8].mxu0 }
 0xcee   :  { %v3794_v37 = vmul.f32 1.442695, %v3711_v35  ;;  %v5055_v44 = vpop.f32.mrb[9].mxu0 }
 0xcf0   :  { %5383 = vpow2.f32 %v3794_v37 }
 0xcf6   :  { %v5382_v48 = vpop.eup %5381 }
 0xcf7   :  { %v3808_v49 = vsel %vm3798_vm14, %v5382_v48, 0.0 }
 0xcf8   :  { %3809 = vadd.xlane.f32.xlu0 %v3808_v49 }
 0xcfa   :  { %v5384_v50 = vpop.eup %5383 }
 0xcfb   :  { %v3805_v46 = vsel %vm3798_vm14, %v5384_v50, 0.0 }
 0xcfc   :  { %3806 = vadd.xlane.f32.xlu0 %v3805_v46 }
 0xd12   :  { %3819 = vrot.lane.b32.xlu0 %v3466_v45, %s5421_s13 }
 0xd13   :  { %v3801_v54 = vpop.xlane.xlu1 %3800 }
 0xd16   :  { %5314 = vrot.lane.b32.xlu0 %v6234_v38, %s5422_s14 }
 0xd17   :  { %v3804_v60 = vpop.xlane.xlu0 %3803  ;;  %v4049_v39 = vpop.permute.xlu1 %4048 }
 0xd18   :  { %5385 = vrcp.f32 %v3804_v60 }
 0xd19   :  { %5387 = vrcp.f32 %v3801_v54 }
 0xd1b   :  { %v3973_v18 = vpop.permute.xlu1 %3972 }
 0xd1f   :  { %v5320_v28 = vpop.permute.xlu1 %5319 }
 0xd20   :  { %v5322_v61 = vunpack.i.h.bf16 %v5320_v28  ;;  %v5321_v63 = vunpack.i.l.bf16 %v5320_v28 }
 0xd22   :  { %v5386_v55 = vpop.eup %5385  ;;  %v5234_v5 = vpack.c.bf16 %v5322_v61, %v5321_v63 }
 0xd23   :  { %v3816_v53 = vmul.f32 %v5386_v55, %v5380_v25  ;;  %v5388_v59 = vpop.eup %5387 }
 0xd24   :  { %v3815_v29 = vmul.f32 %v5388_v59, %v5378_v23 }
 0xd25   :  { %5069 = vmatmul.mubr.msk.f32.vlgmr.msra.gmra.mrb[32].mxu1 %vm3822_vm15, %v3816_v53 }
 0xd26   :  { %5077 = vmatpush3.msra.mxu1 %v4049_v39  ;;  %5078 = vmatprep.mubr.msk.f32.mxu1 %vm5417_vm4, %v5418_v16 }
 0xd27   :  { %5236 = vmatprep.subr.bf16.mxu1 %v5416_v3 }
 0xd85   :  { %v3810_v15 = vpop.xlane.xlu0 %3809 }
 0xd86   :  { %5389 = vrcp.f32 %v3810_v15 }
 0xd89   :  { %v3807_v57 = vpop.xlane.xlu0 %3806 }
 0xd8a   :  { %5391 = vrcp.f32 %v3807_v57 }
 0xd8d   :  { %v3820_v17 = vpop.permute.xlu0 %3819 }
 0xd8e   :  { %5062 = vmatpush3.msra.mxu0 %v3820_v17 }
 0xd8f   :  { %5064 = vmatmul.mubr.msk.f32.vlgmr.msra.gmra.mrb[10].mxu0 %vm3822_vm15, %v3815_v29  ;;  %5071 = vmatprep.subr.mxu0 %v5418_v16 }
 0xd90   :  { %v5390_v56 = vpop.eup %5389  ;;  %5072 = vmatpush3.msra.mxu0 %v3973_v18  ;;  %5073 = vmatprep.mubr.msk.f32.mxu0 %vm5417_vm4, %v5418_v16 }
 0xd91   :  { %v3818_v6 = vmul.f32 %v5390_v56, %v5382_v48  ;;  %5230 = vmatprep.subr.bf16.mxu0 %v5416_v3  ;;  %v5315_v32 = vpop.permute.xlu0 %5314 }
 0xd92   :  { %v5317_v4 = vunpack.i.h.bf16 %v5315_v32  ;;  %v5316_v43 = vunpack.i.l.bf16 %v5315_v32 }
 0xd93   :  { %5079 = vmatmul.mubr.msk.f32.vlgmr.msra.gmra.mrb[34].mxu1 %vm3822_vm15, %v3818_v6 }
 0xd94   :  { %v5392_v1 = vpop.eup %5391  ;;  %5100 = vmatprep.mubr.msk.f32.mxu1 %vm5417_vm4, %v5418_v16  ;;  %v5231_v45 = vpack.c.bf16 %v5317_v4, %v5316_v43 }
 0xd95   :  { %v3817_v2 = vmul.f32 %v5392_v1, %v5384_v50 }
 0xd97   :  { %5074 = vmatmul.mubr.msk.f32.vlgmr.msra.gmra.mrb[12].mxu0 %vm3822_vm15, %v3817_v2 }
 0xd98   :  { %5089 = vmatprep.mubr.msk.f32.mxu0 %vm5417_vm4, %v5418_v16  ;;  %5232 = vmatpush3.bf16.msra.mxu0 %v5231_v45 }
 0xd99   :  { %5233 = vmatprep.subr.bf16.mxu0 %v5416_v3 }
 0xd9c   :  { %5235 = vmatpush3.bf16.msra.mxu0 %v5234_v5 }
 0xd9d   :  { %5242 = vmatprep.subr.bf16.mxu0 %v5416_v3 }
 0xdf8   :  { %v3968_v47 = vpop.f32.mrb[32].mxu1 }
 0xdf9   :  { %v5070_v26 = vpop.f32.mrb[33].mxu1 }
 0xe62   :  { %v3892_v51 = vpop.f32.mrb[10].mxu0 }
 0xe63   :  { %v5065_v62 = vpop.f32.mrb[11].mxu0 }
 0xe66   :  { %v4120_v10 = vpop.f32.mrb[34].mxu1 }
 0xe67   :  { %4128 = vrot.lane.b32.xlu0 %v4120_v10, %s5423_s15  ;;  %v5080_v36 = vpop.f32.mrb[35].mxu1 }
 0xe6a   :  { %v4044_v8 = vpop.f32.mrb[12].mxu0 }
 0xe6b   :  { %4126 = vrot.lane.b32.xlu1 %v4044_v8, %s5423_s15  ;;  %v5075_v20 = vpop.f32.mrb[13].mxu0 }
 0xed9   :  { %v4129_v0 = vpop.permute.xlu0 %4128 }
 0xeda   :  { %v4133_v19 = vsel %vm885_vm6, %v3968_v47, %v4129_v0  ;;  %v4299_v0 = vstv %s4803_s21 }
 0xedb   :  { %v4140_v11 = vrot.slane %v4133_v19, 7 }
 0xedd   :  { %v4127_v12 = vpop.permute.xlu1 %4126 }
 0xede   :  { %v4132_v14 = vsel %vm885_vm6, %v3892_v51, %v4127_v12 }
 0xedf   :  { %v4141_v23 = vsel %vm160_vm2, %v4140_v11, %v4132_v14 }
 0xee0   :  { %5090 = vmatmul.mubr.msk.f32.vlgmr.msra.gmra.mrb[14].mxu0 %vm218_vm5, %v4141_v23 }
 0xee1   :  { %5111 = vmatprep.mubr.msk.f32.mxu0 %vm5417_vm4, %v5418_v16 }
 0xfb3   :  { %v4226_v25 = vpop.f32.mrb[14].mxu0 }
 0xfb4   :  { %v4227_v30 = vadd.f32 %v4226_v25, %v4137_v24  ;;  %v5091_v31 = vpop.f32.mrb[15].mxu0 }
 0xfb5   :  { %v4407_v31 = vld [vmem:[%s6361_s3 + $0x78] sm:$0xff] }
 0xfb6   :  { %v4237_v33 = vrot.slane %v4227_v30, %v5622_v34  ;;  %v4406_v30 = vld [vmem:[%s6361_s3 + $0x58] sm:$0xff] }
 0xfb8   :  { %v4238_v42 = vcombine.high %v4237_v33, %v4237_v33  ;;  %v4245_v35 = vrot.slane %v4237_v33, %v5622_v34  ;;  %v5246_v33 = vpack.c.bf16 %v4407_v31, %v4406_v30 }
 0xfba   :  { %v4252_v37 = vrot.slane %v4238_v42, %v5622_v34  ;;  %v4256_v44 = vrot.slane %v4245_v35, %v5548_v41  ;;  %v4309_v42 = vrot.slane %v6047_v13, %v5610_v21 }
 0xfbc   :  { %v4263_v48 = vadd.f32 %v4256_v44, %v6164_v7  ;;  %v4260_v49 = vrot.slane %v4252_v37, %v5548_v41  ;;  %v6281_v7 = vld [vmem:[%s6361_s3 + $0x18] sm:$0xff] }
 0xfbe   :  { %v4267_v50 = vsel %vm3222_vm11, %v4263_v48, 0.0  ;;  %v4264_v52 = vadd.f32 %v4260_v49, %v6166_v9  ;;  %v4276_v46 = vmul.f32 %v4263_v48, %v4263_v48  ;;  %v6286_v9 = vld [vmem:[%s6361_s3 + $0x38] sm:$0xff]  ;;  %v4411_v49 = vrot.slane %v6047_v13, %v5613_v22  ;;  %s4806_s3 = sld [smem:[#allocation2 + $0x4]] }
 0xfbf   :  { %4268 = vadd.xlane.f32.xlu0 %v4267_v50  ;;  %v5243_v39 = vpack.c.bf16 %v6286_v9, %v6281_v7 }
 0xfc0   :  { %v4270_v60 = vsel %vm3222_vm11, %v4264_v52, 0.0  ;;  %v4278_v54 = vsel %vm3222_vm11, %v4276_v46, 0.0  ;;  %v4277_v55 = vmul.f32 %v4264_v52, %v4264_v52 }
 0xfc1   :  { %4271 = vadd.xlane.f32.xlu1 %v4270_v60  ;;  %5244 = vmatpush3.bf16.msra.mxu0 %v5243_v39 }
 0xfc2   :  { %v4281_v53 = vsel %vm3222_vm11, %v4277_v55, 0.0  ;;  %5245 = vmatprep.subr.bf16.mxu0 %v5416_v3 }
 0xfc3   :  { %4279 = vadd.xlane.f32.xlu0 %v4278_v54 }
 0xfc5   :  { %5247 = vmatpush3.bf16.msra.mxu0 %v5246_v33 }
 0xfc6   :  { %5254 = vmatprep.subr.bf16.mxu0 %v5416_v3 }
 0xfc7   :  { %4282 = vadd.xlane.f32.xlu0 %v4281_v53 }
 0xfd2   :  { %5324 = vrot.lane.b32.xlu1 %v6234_v38, %s5424_s16 }
 0xfdd   :  { %5329 = vrot.lane.b32.xlu0 %v5318_v27, %s5424_s16  ;;  %s4802_s16 = sld [smem:[#allocation2 + $0x2]] }
 0xfe3   :  { %v4295_v62 = vstv %s4802_s16 }
0x104c   :  { %v4269_v15 = vpop.xlane.xlu0 %4268 }
0x104d   :  { %v4273_v57 = vsel %vm3229_vm12, %v4269_v15, 0.0 }
0x104e   :  { %v4272_v38 = vpop.xlane.xlu1 %4271 }
0x104f   :  { %v4274_v59 = vsel %vm3229_vm12, %v4272_v38, 0.0 }
0x1050   :  { %v4275_v29 = vadd.f32 %v4274_v59, %v4273_v57  ;;  %v4280_v17 = vpop.xlane.xlu0 %4279 }
0x1051   :  { %v4284_v27 = vsel %vm3229_vm12, %v4280_v17, 0.0  ;;  %v5338_v17 = vpack.i.bf16 %v4407_v31, %v4406_v30 }
0x1052   :  { %v5325_v18 = vpop.permute.xlu1 %5324  ;;  %v4287_v1 = vmul.f32 0.015625, %v4275_v29  ;;  %v5333_v29 = vpack.i.bf16 %v6286_v9, %v6281_v7 }
0x1053   :  { %v5327_v56 = vunpack.i.h.bf16 %v5325_v18  ;;  %v5326_v6 = vunpack.i.l.bf16 %v5325_v18 }
0x1054   :  { %v4283_v2 = vpop.xlane.xlu0 %4282  ;;  %v4289_v47 = vmul.f32 %v4287_v1, %v4287_v1  ;;  %v4291_v36 = vsub.f32 %v4263_v48, %v4287_v1  ;;  %v4292_v8 = vsub.f32 %v4264_v52, %v4287_v1 }
0x1055   :  { %v4285_v32 = vsel %vm3229_vm12, %v4283_v2, 0.0  ;;  %v5237_v4 = vpack.c.bf16 %v5327_v56, %v5326_v6 }
0x1056   :  { %v4286_v43 = vadd.f32 %v4285_v32, %v4284_v27 }
0x1057   :  { %5238 = vmatpush3.bf16.msra.mxu1 %v5237_v4 }
0x1058   :  { %v4288_v45 = vmul.f32 0.015625, %v4286_v43  ;;  %v5330_v26 = vpop.permute.xlu0 %5329  ;;  %5239 = vmatprep.subr.bf16.mxu1 %v5416_v3 }
0x1059   :  { %v5332_v28 = vunpack.i.h.bf16 %v5330_v26  ;;  %v5331_v61 = vunpack.i.l.bf16 %v5330_v26 }
0x105a   :  { %v4290_v63 = vsub.f32 %v4288_v45, %v4289_v47 }
0x105b   :  { %v5240_v5 = vpack.c.bf16 %v5332_v28, %v5331_v61 }
0x105c   :  { %v4293_v51 = vadd.f32 1e-05, %v4290_v63 }
0x105d   :  { %5241 = vmatpush3.bf16.msra.mxu1 %v5240_v5 }
0x105e   :  { %5393 = vrsqrt.f32 %v4293_v51  ;;  %5248 = vmatprep.subr.bf16.mxu1 %v5416_v3 }
0x1068   :  { %v5394_v10 = vpop.eup %5393 }
0x1069   :  { %v4296_v20 = vmul.f32 %v5394_v10, %v4295_v62 }
0x106b   :  { %v4297_v19 = vmul.f32 %v4296_v20, %v4291_v36  ;;  %v4298_v11 = vmul.f32 %v4296_v20, %v4292_v8 }
0x106d   :  { %v4300_v12 = vadd.f32 %v4299_v0, %v4297_v19  ;;  %v4301_v14 = vadd.f32 %v4299_v0, %v4298_v11 }
0x106f   :  { %v4312_v23 = vrot.slane %v4300_v12, 6  ;;  %v4313_v24 = vrot.slane %v4301_v14, 5 }
0x1071   :  { %v4314_v25 = vsel %vm160_vm2, %v4313_v24, %v4312_v23 }
0x1072   :  { %5101 = vmatmul.mubr.msk.f32.vlgmr.msra.gmra.mrb[36].mxu1 %vm218_vm5, %v4314_v25  ;;  %v4550_v25 = vstv %s4806_s3 }
0x1073   :  { %5122 = vmatprep.mubr.msk.f32.mxu1 %vm5417_vm4, %v5418_v16 }
0x1145   :  { %v4399_v35 = vpop.f32.mrb[36].mxu1 }
0x1146   :  { %v4400_v37 = vadd.f32 %v4399_v35, %v4309_v42  ;;  %v5102_v44 = vpop.f32.mrb[37].mxu1 }
0x1148   :  { %v4403_v48 = vmax.f32 %v4400_v37, 0.0 }
0x114a   :  { %5112 = vmatmul.mubr.msk.f32.vlgmr.msra.gmra.mrb[16].mxu0 %vm218_vm5, %v4403_v48 }
0x114b   :  { %5133 = vmatprep.mubr.msk.f32.mxu0 %vm5417_vm4, %v5418_v16 }
0x121d   :  { %v4481_v50 = vpop.f32.mrb[16].mxu0 }
0x121e   :  { %v4482_v52 = vadd.f32 %v4481_v50, %v4411_v49  ;;  %v5113_v46 = vpop.f32.mrb[17].mxu0 }
0x1220   :  { %v4492_v60 = vrot.slane %v4482_v52, %v5622_v34 }
0x1222   :  { %v4493_v54 = vcombine.high %v4492_v60, %v4492_v60  ;;  %v4500_v21 = vrot.slane %v4492_v60, %v5622_v34 }
0x1224   :  { %v4507_v55 = vrot.slane %v4493_v54, %v5622_v34  ;;  %v4511_v53 = vrot.slane %v4500_v21, %v5548_v41 }
0x1226   :  { %v6319_v39 = vadd.f32 %v4511_v53, %v4300_v12  ;;  %v4515_v15 = vrot.slane %v4507_v55, %v5548_v41 }
0x1228   :  { %v4522_v16 = vsel %vm3222_vm11, %v6319_v39, 0.0  ;;  %v6324_v22 = vadd.f32 %v4515_v15, %v4301_v14  ;;  %v4531_v38 = vmul.f32 %v6319_v39, %v6319_v39 }
0x1229   :  { %4523 = vadd.xlane.f32.xlu1 %v4522_v16 }
0x122a   :  { %v4525_v57 = vsel %vm3222_vm11, %v6324_v22, 0.0  ;;  %v4532_v34 = vmul.f32 %v6324_v22, %v6324_v22  ;;  %v4533_v59 = vsel %vm3222_vm11, %v4531_v38, 0.0 }
0x122b   :  { %4526 = vadd.xlane.f32.xlu0 %v4525_v57 }
0x122c   :  { %v4536_v41 = vsel %vm3222_vm11, %v4532_v34, 0.0 }
0x122d   :  { %4534 = vadd.xlane.f32.xlu1 %v4533_v59 }
0x122f   :  { %4537 = vadd.xlane.f32.xlu0 %v4536_v41 }
0x123e   :  { %5334 = vrot.lane.b32.xlu1 %v5333_v29, %s5421_s13 }
0x1242   :  { %5344 = vrot.lane.b32.xlu1 %v5333_v29, %s5422_s14 }
0x1245   :  { %5339 = vrot.lane.b32.xlu0 %v5338_v17, %s5421_s13  ;;  %s4807_s13 = sld [smem:[#allocation2 + $0x5]] }
0x1246   :  { %5349 = vrot.lane.b32.xlu1 %v5338_v17, %s5422_s14  ;;  %s4809_s14 = sld [smem:[#allocation2 + $0x6]] }
0x124b   :  { %v4554_v35 = vstv %s4807_s13 }
0x124c   :  { %v4660_v53 = vstv %s4809_s14 }
0x12b6   :  { %v4524_v18 = vpop.xlane.xlu1 %4523 }
0x12b7   :  { %v4528_v6 = vsel %vm3229_vm12, %v4524_v18, 0.0 }
0x12b8   :  { %v4527_v56 = vpop.xlane.xlu0 %4526 }
0x12b9   :  { %v4529_v1 = vsel %vm3229_vm12, %v4527_v56, 0.0 }
0x12ba   :  { %v4530_v2 = vadd.f32 %v4529_v1, %v4528_v6  ;;  %v4535_v27 = vpop.xlane.xlu1 %4534 }
0x12bb   :  { %v4539_v7 = vsel %vm3229_vm12, %v4535_v27, 0.0 }
0x12bc   :  { %v4542_v32 = vmul.f32 0.015625, %v4530_v2  ;;  %v4538_v4 = vpop.xlane.xlu0 %4537 }
0x12bd   :  { %v4540_v9 = vsel %vm3229_vm12, %v4538_v4, 0.0 }
0x12be   :  { %v4541_v43 = vadd.f32 %v4540_v9, %v4539_v7  ;;  %v5335_v45 = vpop.permute.xlu1 %5334  ;;  %v4544_v28 = vmul.f32 %v4542_v32, %v4542_v32  ;;  %v4546_v31 = vsub.f32 %v6319_v39, %v4542_v32  ;;  %v4547_v33 = vsub.f32 %v6324_v22, %v4542_v32 }
0x12bf   :  { %v5337_v47 = vunpack.i.h.bf16 %v5335_v45  ;;  %v5336_v26 = vunpack.i.l.bf16 %v5335_v45 }
0x12c0   :  { %v4543_v61 = vmul.f32 0.015625, %v4541_v43  ;;  %v5340_v63 = vpop.permute.xlu0 %5339 }
0x12c1   :  { %v5249_v5 = vpack.c.bf16 %v5337_v47, %v5336_v26  ;;  %v5342_v51 = vunpack.i.h.bf16 %v5340_v63  ;;  %v5341_v62 = vunpack.i.l.bf16 %v5340_v63 }
0x12c2   :  { %v4545_v10 = vsub.f32 %v4543_v61, %v4544_v28  ;;  %v5345_v36 = vpop.permute.xlu1 %5344 }
0x12c3   :  { %v5252_v8 = vpack.c.bf16 %v5342_v51, %v5341_v62  ;;  %5250 = vmatpush3.bf16.msra.mxu1 %v5249_v5  ;;  %v5347_v20 = vunpack.i.h.bf16 %v5345_v36  ;;  %v5346_v0 = vunpack.i.l.bf16 %v5345_v36 }
0x12c4   :  { %v4548_v19 = vadd.f32 1e-05, %v4545_v10  ;;  %5251 = vmatprep.subr.bf16.mxu1 %v5416_v3 }
0x12c5   :  { %v5255_v11 = vpack.c.bf16 %v5347_v20, %v5346_v0 }
0x12c6   :  { %5395 = vrsqrt.f32 %v4548_v19  ;;  %v5350_v12 = vpop.permute.xlu1 %5349 }
0x12c7   :  { %5253 = vmatpush3.bf16.msra.mxu1 %v5252_v8  ;;  %v5352_v14 = vunpack.i.h.bf16 %v5350_v12  ;;  %v5351_v23 = vunpack.i.l.bf16 %v5350_v12  ;;  %5256 = vmatpush3.bf16.msra.mxu0 %v5255_v11 }
0x12c8   :  { %5257 = vmatprep.subr.bf16.mxu0 %v5416_v3  ;;  %v4564_v3 = vrot.slane %v6047_v13, %v2959_v58 }
0x12c9   :  { %v5258_v24 = vpack.c.bf16 %v5352_v14, %v5351_v23 }
0x12cb   :  { %5259 = vmatpush3.bf16.msra.mxu0 %v5258_v24 }
0x12d0   :  { %v5396_v30 = vpop.eup %5395 }
0x12d1   :  { %v4551_v42 = vmul.f32 %v5396_v30, %v4550_v25 }
0x12d3   :  { %v4552_v37 = vmul.f32 %v4551_v42, %v4546_v31  ;;  %v4553_v44 = vmul.f32 %v4551_v42, %v4547_v33 }
0x12d5   :  { %v4555_v48 = vadd.f32 %v4554_v35, %v4552_v37  ;;  %v4556_v49 = vadd.f32 %v4554_v35, %v4553_v44 }
0x12d7   :  { %v4567_v50 = vrot.slane %v4555_v48, 6  ;;  %v4568_v52 = vrot.slane %v4556_v49, 5 }
0x12d9   :  { %v4569_v46 = vsel %vm160_vm2, %v4568_v52, %v4567_v50 }
0x12da   :  { %5123 = vmatmul.mubr.msk.f32.vlgmr.msra.gmra.mrb[38].mxu1 %vm218_vm5, %v4569_v46 }
0x13ad   :  { %v4654_v60 = vpop.f32.mrb[38].mxu1 }
0x13ae   :  { %v4655_v54 = vadd.f32 %v4654_v60, %v4564_v3  ;;  %v5124_v21 = vpop.f32.mrb[39].mxu1 }
0x13b0   :  { %v4658_v55 = vmax.f32 %v4655_v54, 0.0 }
0x13b2   :  { %5134 = vmatmul.mubr.msk.f32.vlgmr.msra.gmra.mrb[18].mxu0 %vm218_vm5, %v4658_v55 }
0x1485   :  { %v4742_v39 = vpop.f32.mrb[18].mxu0 }
0x1486   :  { %v4743_v15 = vadd.f32 %v4742_v39, %v4660_v53  ;;  %v5135_v16 = vpop.f32.mrb[19].mxu0 }
0x1488   :  { %4746 = vst.msk [vmem:[%s6362_s4] sm:$0x3] %vm163_vm3, %v4743_v15 }
0x1489   :  { %4751 = vsyncpa [#allocation3], 1 }

</bundles_post_ra>
